<compile_context>
chip_gen: v5e
topology: v5e:2x2
jax: 0.10.0
libtpu: 0.0.40
codegen_flags: <defaults>
</compile_context>

<pallas_src>
import functools
import math

import jax
import jax.numpy as jnp
from jax.experimental import pallas as pl
from jax.experimental.pallas import tpu as pltpu


# ----------------------------- config (small, consistent with module defaults)
EMB_LENGTH = 32            # cfg.emb_length -> num_channels / num_cond_emb_channels
WINDOW_SIZE = 8            # cfg.window_size
NUM_HID = 64               # num_hid_channels (default 2048, scaled down)
NUM_LAYERS = 4             # num_layers      (default 20, scaled down)
NUM_TIME_EMB = 64          # num_time_emb_channels
NUM_TIME_LAYERS = 2
NUM_COND_LAYERS = 2
TIME_LAST_ACT = False
COND_LAST_ACT = False
CONDITION_BIAS = 1.0
LN_EPS = 1e-5
SKIP_LAYERS = tuple(range(1, NUM_LAYERS))   # skip_layers='all'
DIFFUSION_T = 10
ONLINE = False

PAD = 128           # lane-dense feature width (all real feature dims <= 128 here)
ROW_TILE_MAX = 128  # sublane tile for the row-parallel grid axis


def _layer_dims(i):
    """Static per-layer structure of MLPSkipNet (mirrors the torch __init__)."""
    if i == 0:
        d_in, d_out, use_cond, use_norm = EMB_LENGTH, NUM_HID, True, True
    elif i == NUM_LAYERS - 1:
        d_in, d_out, use_cond, use_norm = NUM_HID, EMB_LENGTH, False, False
    else:
        d_in, d_out, use_cond, use_norm = NUM_HID, NUM_HID, True, True
    skip = i in SKIP_LAYERS
    act = i != NUM_LAYERS - 1          # main blocks: SiLU; last layer: none
    return d_in, d_out, skip, use_cond, use_norm, act


# (skip, use_cond, use_norm, act) per layer -- static, kept OUT of the pytree.
LAYER_META = tuple(_layer_dims(i)[2:] for i in range(NUM_LAYERS))


def _silu(x):
    # x * sigmoid(x) with sigmoid = 0.5*(tanh(x/2)+1): a single EUP push.
    return x * (0.5 * jnp.tanh(0.5 * x) + 0.5)


def _round_up(x, m):
    return (x + m - 1) // m * m


def _pad_to(a, shape):
    return jnp.pad(a, [(0, s - d) for d, s in zip(a.shape, shape)])


def _pad2(a, rows, cols):
    r, c = a.shape
    return jnp.pad(a, ((0, rows - r), (0, cols - c)))


# --------------------------------------------------------------- fused kernel
def _fused_mlp_skip_net_kernel(
        x_ref, temb_ref, cond_ref,
        time_w_ref, time_b_ref, cond_w_ref, cond_b_ref,
        wh_ref, wx_ref, wc_ref, vec_ref,
        o_ref,
        *, n_time, n_cond, layer_meta, time_last_act, cond_last_act,
        condition_bias, eps, ln_inv):
    """Whole MLPSkipNet denoiser on one row tile; all weights VMEM-resident."""
    x = x_ref[...]                               # (Rt, PAD) f32, padded lanes 0
    x_bf = x.astype(jnp.bfloat16)

    # ---- time-embedding MLP
    h = temb_ref[...]
    for i in range(n_time):
        h = jnp.dot(h.astype(jnp.bfloat16), time_w_ref[i],
                    preferred_element_type=jnp.float32)
        h = h + time_b_ref[i:i + 1, :]
        if i < n_time - 1 or time_last_act:
            h = _silu(h)

    # ---- cond-embedding MLP
    c = cond_ref[...]
    for i in range(n_cond):
        c = jnp.dot(c.astype(jnp.bfloat16), cond_w_ref[i],
                    preferred_element_type=jnp.float32)
        c = c + cond_b_ref[i:i + 1, :]
        if i < n_cond - 1 or cond_last_act:
            c = _silu(c)

    # combined conditioning; SiLU applied ONCE and reused by every block
    cond_act = _silu(h + c).astype(jnp.bfloat16)

    # ---- main skip blocks
    hcur = x
    for li, (skip, use_cond, use_norm, act) in enumerate(layer_meta):
        y = jnp.dot(hcur.astype(jnp.bfloat16), wh_ref[li],
                    preferred_element_type=jnp.float32)
        if skip:  # split-weight skip: equivalent to concat([h, x]) @ W
            y = y + jnp.dot(x_bf, wx_ref[li],
                            preferred_element_type=jnp.float32)
        vec = vec_ref[li]                        # (4, PAD): b, bc, gamma, beta
        y = y + vec[0:1, :]
        if use_cond:
            scale = jnp.dot(cond_act, wc_ref[li],
                            preferred_element_type=jnp.float32) + vec[1:2, :]
            y = y * (condition_bias + scale)
        if use_norm:
            # Single-pass LayerNorm over the REAL features: padded lanes are 0,
            # so they drop out of both sums; biased variance as in torch.
            s1 = jnp.sum(y, axis=-1, keepdims=True)
            s2 = jnp.sum(y * y, axis=-1, keepdims=True)
            mu = s1 * ln_inv
            var = s2 * ln_inv - mu * mu
            y = (y - mu) * jax.lax.rsqrt(var + eps)
            y = y * vec[2:3, :] + vec[3:4, :]    # padded gamma/beta = 0 -> stay 0
        if act:
            y = _silu(y)
        hcur = y

    o_ref[...] = hcur.astype(o_ref.dtype)


# --------------------------------------------------------------- parameter init
def _init_linear(key, din, dout):
    k1, k2 = jax.random.split(key)
    bound = 1.0 / math.sqrt(din)
    w = jax.random.uniform(k1, (din, dout), jnp.float32, -bound, bound)
    b = jax.random.uniform(k2, (dout,), jnp.float32, -bound, bound)
    return w, b


def init_mlp_skip_net_params(key):
    """MLPSkipNet params in the packed, lane-padded, bf16 fused-kernel layout."""
    kit = iter(jax.random.split(key, 32))

    # time embedding MLP: Linear(64, C) [SiLU] Linear(C, C)
    tw, tb = [], []
    for i in range(NUM_TIME_LAYERS):
        a = NUM_TIME_EMB if i == 0 else EMB_LENGTH
        w, b = _init_linear(next(kit), a, EMB_LENGTH)
        tw.append(_pad_to(w, (PAD, PAD)))
        tb.append(_pad_to(b, (PAD,)))

    # cond embedding MLP: Linear(C, C) [SiLU] Linear(C, C)
    cw, cb = [], []
    for _ in range(NUM_COND_LAYERS):
        w, b = _init_linear(next(kit), EMB_LENGTH, EMB_LENGTH)
        cw.append(_pad_to(w, (PAD, PAD)))
        cb.append(_pad_to(b, (PAD,)))

    # main skip blocks: init the full concat weight, then split into W_h | W_x
    whs, wxs, wcs, vecs = [], [], [], []
    for i in range(NUM_LAYERS):
        d_in, d_out, skip, use_cond, use_norm, _act = _layer_dims(i)
        fan_in = d_in + (EMB_LENGTH if skip else 0)
        w_full, b = _init_linear(next(kit), fan_in, d_out)
        wh = w_full[:d_in]
        wx = (w_full[d_in:] if skip
              else jnp.zeros((EMB_LENGTH, d_out), jnp.float32))
        if use_cond:
            wc, bc = _init_linear(next(kit), EMB_LENGTH, d_out)
        else:
            wc = jnp.zeros((EMB_LENGTH, d_out), jnp.float32)
            bc = jnp.zeros((d_out,), jnp.float32)
        # gamma = 1 on real lanes, 0 on padded lanes -> padded lanes stay 0
        # after LayerNorm; beta = 0 everywhere.
        gamma = (jnp.arange(PAD) < d_out).astype(jnp.float32)
        beta = jnp.zeros((PAD,), jnp.float32)
        whs.append(_pad_to(wh, (PAD, PAD)))
        wxs.append(_pad_to(wx, (PAD, PAD)))
        wcs.append(_pad_to(wc, (PAD, PAD)))
        vecs.append(jnp.stack([_pad_to(b, (PAD,)), _pad_to(bc, (PAD,)),
                               gamma, beta]))

    return {
        "time_w": jnp.stack(tw).astype(jnp.bfloat16),   # (T,  PAD, PAD)
        "time_b": jnp.stack(tb),                        # (T,  PAD) f32
        "cond_w": jnp.stack(cw).astype(jnp.bfloat16),   # (Tc, PAD, PAD)
        "cond_b": jnp.stack(cb),                        # (Tc, PAD) f32
        "wh": jnp.stack(whs).astype(jnp.bfloat16),      # (L,  PAD, PAD)
        "wx": jnp.stack(wxs).astype(jnp.bfloat16),      # (L,  PAD, PAD)
        "wc": jnp.stack(wcs).astype(jnp.bfloat16),      # (L,  PAD, PAD)
        "vec": jnp.stack(vecs),                         # (L, 4, PAD) f32
    }


# --------------------------------------------------------------- model forward
def timestep_embedding(t, dim, max_period=10000.0):
    half = dim // 2
    freqs = jnp.exp(-math.log(max_period) *
                    jnp.arange(half, dtype=jnp.float32) / half)
    args = t.astype(jnp.float32)[:, None] * freqs[None, :]
    return jnp.concatenate([jnp.cos(args), jnp.sin(args)], axis=-1)


def mlp_skip_net_forward(params, x_rows, t_rows, cond_rows):
    """MLPSkipNet denoiser fused into a single pallas_call.
       x_rows/cond_rows: (R, EMB_LENGTH) f32; t_rows: (R,) int32."""
    R, C = x_rows.shape
    assert C == EMB_LENGTH
    temb = timestep_embedding(t_rows, NUM_TIME_EMB)          # (R, 64)

    # Lane-dense padding: features -> 128 lanes, rows -> multiple of row tile.
    row_tile = min(ROW_TILE_MAX, _round_up(R, 8))
    r_pad = _round_up(R, row_tile)
    x_p = _pad2(x_rows, r_pad, PAD)
    cond_p = _pad2(cond_rows, r_pad, PAD)
    temb_p = _pad2(temb, r_pad, PAD)

    kernel = functools.partial(
        _fused_mlp_skip_net_kernel,
        n_time=NUM_TIME_LAYERS, n_cond=NUM_COND_LAYERS, layer_meta=LAYER_META,
        time_last_act=TIME_LAST_ACT, cond_last_act=COND_LAST_ACT,
        condition_bias=CONDITION_BIAS, eps=LN_EPS, ln_inv=1.0 / NUM_HID)

    # Activations: row-tiled (parallel across TensorCores for large batches).
    act_spec = pl.BlockSpec((row_tile, PAD), lambda i: (i, 0))
    # Weight stacks: whole-array VMEM residents, DMA'd once, single-buffered.
    res_spec = pl.BlockSpec(memory_space=pltpu.MemorySpace.VMEM)

    out = pl.pallas_call(
        kernel,
        out_shape=jax.ShapeDtypeStruct((r_pad, PAD), jnp.float32),
        grid=(r_pad // row_tile,),
        in_specs=[act_spec, act_spec, act_spec] + [res_spec] * 8,
        out_specs=pl.BlockSpec((row_tile, PAD), lambda i: (i, 0)),
        compiler_params=pltpu.CompilerParams(
            dimension_semantics=("parallel",)),
    )(x_p, temb_p, cond_p,
      params["time_w"], params["time_b"], params["cond_w"], params["cond_b"],
      params["wh"], params["wx"], params["wc"], params["vec"])

    return out[:R, :C]


# --------------------------------------------------------------- matcher forward
def latent_mlp_matcher_forward(params, speaker_emotion, listener_emotion, key):
    """Training-path semantics of LatentMLPMatcher.forward (offline mode):
       slice a window, sample timesteps, q_sample, run the MLPSkipNet denoiser."""
    B, S, C = speaker_emotion.shape
    W = WINDOW_SIZE

    if ONLINE:
        speaker_emotion = speaker_emotion[:, :-W]
        listener_emotion = listener_emotion[:, W:]

    # TODO(synk): torch.randint window_start and UniformSampler.sample are random;
    # fixed to window_start=0 and a deterministic timestep assignment here.
    window_start = 0
    x_start = listener_emotion[:, window_start:window_start + W]   # (B, W, C)
    cond = speaker_emotion[:, window_start:window_start + W]       # (B, W, C)
    t = jnp.arange(B, dtype=jnp.int32) % DIFFUSION_T                # (B,)

    # q_sample (linear beta schedule), as in LatentDiffusion.denoise's forward
    # process.
    betas = jnp.linspace(1e-4, 2e-2, DIFFUSION_T, dtype=jnp.float32)
    alphas_bar = jnp.cumprod(1.0 - betas)
    noise = jax.random.normal(key, x_start.shape, jnp.float32)
    sqrt_ab = jnp.sqrt(alphas_bar)[t][:, None, None]
    sqrt_1mab = jnp.sqrt(1.0 - alphas_bar)[t][:, None, None]
    x_t = sqrt_ab * x_start + sqrt_1mab * noise                      # (B, W, C)

    # flatten to rows; broadcast per-batch timestep across the window frames.
    # (For real training, batch many windows per call so rows >= 128-256.)
    x_rows = x_t.reshape(B * W, C)
    cond_rows = cond.reshape(B * W, C)
    t_rows = jnp.repeat(t, W)

    out_rows = mlp_skip_net_forward(params, x_rows, t_rows, cond_rows)
    # TODO(synk): full LatentDiffusion training loss / ddim_sample_loop_progressive
    # depend on the external LatentDiffusion class and are not reproduced here.
    return out_rows.reshape(B, W, C)


# --------------------------------------------------------------------- driver
if __name__ == "__main__":
    key = jax.random.PRNGKey(0)
    k_param, k_spk, k_lst, k_noise = jax.random.split(key, 4)

    params = init_mlp_skip_net_params(k_param)

    B, S, C = 2, 2 * WINDOW_SIZE, EMB_LENGTH
    speaker_emotion = jax.random.normal(k_spk, (B, S, C), jnp.float32)
    listener_emotion = jax.random.normal(k_lst, (B, S, C), jnp.float32)

    forward = jax.jit(latent_mlp_matcher_forward)
    out = forward(params, speaker_emotion, listener_emotion, k_noise)
    jax.block_until_ready(out)
    assert out.shape == (B, WINDOW_SIZE, C) and out.dtype == jnp.float32
    assert bool(jnp.all(jnp.isfinite(out)))
    print("KERNEL_OK")
</pallas_src>

<mosaic_0001>
module attributes {stable_mosaic.version = 11 : i64} {
  func.func @_fused_mlp_skip_net_kernel(%arg0: i32, %arg1: memref<16x128xf32, #tpu.memory_space<vmem>>, %arg2: memref<16x128xf32, #tpu.memory_space<vmem>>, %arg3: memref<16x128xf32, #tpu.memory_space<vmem>>, %arg4: memref<2x128x128xbf16, #tpu.memory_space<vmem>>, %arg5: memref<2x128xf32, #tpu.memory_space<vmem>>, %arg6: memref<2x128x128xbf16, #tpu.memory_space<vmem>>, %arg7: memref<2x128xf32, #tpu.memory_space<vmem>>, %arg8: memref<4x128x128xbf16, #tpu.memory_space<vmem>>, %arg9: memref<4x128x128xbf16, #tpu.memory_space<vmem>>, %arg10: memref<4x128x128xbf16, #tpu.memory_space<vmem>>, %arg11: memref<4x4x128xf32, #tpu.memory_space<vmem>>, %arg12: memref<16x128xf32, #tpu.memory_space<vmem>>) attributes {dimension_semantics = [#tpu.dimension_semantics<parallel>], iteration_bounds = array<i64: 1>, scalar_prefetch = 0 : i64, scratch_operands = 0 : i64, tpu.core_type = #tpu.core_type<tc>, window_params = [{transform_indices = @transform_0, window_bounds = array<i64: 16, 128>}, {transform_indices = @transform_1, window_bounds = array<i64: 16, 128>}, {transform_indices = @transform_2, window_bounds = array<i64: 16, 128>}, {pipeline_mode = #tpu.pipeline_mode<synchronous>, transform_indices = @transform_3, window_bounds = array<i64: 2, 128, 128>}, {pipeline_mode = #tpu.pipeline_mode<synchronous>, transform_indices = @transform_4, window_bounds = array<i64: 2, 128>}, {pipeline_mode = #tpu.pipeline_mode<synchronous>, transform_indices = @transform_5, window_bounds = array<i64: 2, 128, 128>}, {pipeline_mode = #tpu.pipeline_mode<synchronous>, transform_indices = @transform_6, window_bounds = array<i64: 2, 128>}, {pipeline_mode = #tpu.pipeline_mode<synchronous>, transform_indices = @transform_7, window_bounds = array<i64: 4, 128, 128>}, {pipeline_mode = #tpu.pipeline_mode<synchronous>, transform_indices = @transform_8, window_bounds = array<i64: 4, 128, 128>}, {pipeline_mode = #tpu.pipeline_mode<synchronous>, transform_indices = @transform_9, window_bounds = array<i64: 4, 128, 128>}, {pipeline_mode = #tpu.pipeline_mode<synchronous>, transform_indices = @transform_10, window_bounds = array<i64: 4, 4, 128>}, {transform_indices = @transform_11, window_bounds = array<i64: 16, 128>}]} {
    %c0 = arith.constant 0 : index
    %c0_0 = arith.constant 0 : index
    %0 = vector.load %arg1[%c0, %c0_0] : memref<16x128xf32, #tpu.memory_space<vmem>>, vector<16x128xf32>
    %1 = arith.truncf %0 : vector<16x128xf32> to vector<16x128xbf16>
    %c0_1 = arith.constant 0 : index
    %c0_2 = arith.constant 0 : index
    %2 = vector.load %arg2[%c0_1, %c0_2] : memref<16x128xf32, #tpu.memory_space<vmem>>, vector<16x128xf32>
    %3 = arith.truncf %2 : vector<16x128xf32> to vector<16x128xbf16>
    %c0_3 = arith.constant 0 : index
    %c0_4 = arith.constant 0 : index
    %c0_5 = arith.constant 0 : index
    %4 = vector.load %arg4[%c0_3, %c0_4, %c0_5] : memref<2x128x128xbf16, #tpu.memory_space<vmem>>, vector<1x128x128xbf16>
    %5 = vector.shape_cast %4 : vector<1x128x128xbf16> to vector<128x128xbf16>
    %cst = arith.constant dense<0.000000e+00> : vector<16x128xf32>
    %6 = tpu.matmul %3, %5, %cst {dimension_numbers = #tpu.dot_dimension_numbers<[1], [0], [0], [1], [0, 0, 1, 1], [], []>} : vector<16x128xbf16>, vector<128x128xbf16>, vector<16x128xf32> -> vector<16x128xf32>
    %c0_6 = arith.constant 0 : index
    %c0_7 = arith.constant 0 : index
    %7 = vector.load %arg5[%c0_6, %c0_7] : memref<2x128xf32, #tpu.memory_space<vmem>>, vector<1x128xf32>
    %8 = vector.broadcast %7 : vector<1x128xf32> to vector<16x128xf32>
    %9 = arith.addf %6, %8 : vector<16x128xf32>
    %cst_8 = arith.constant 5.000000e-01 : f32
    %10 = vector.broadcast %cst_8 : f32 to vector<16x128xf32>
    %11 = arith.mulf %10, %9 : vector<16x128xf32>
    %12 = math.tanh %11 : vector<16x128xf32>
    %cst_9 = arith.constant 5.000000e-01 : f32
    %13 = vector.broadcast %cst_9 : f32 to vector<16x128xf32>
    %14 = arith.mulf %13, %12 : vector<16x128xf32>
    %cst_10 = arith.constant 5.000000e-01 : f32
    %15 = vector.broadcast %cst_10 : f32 to vector<16x128xf32>
    %16 = arith.addf %14, %15 : vector<16x128xf32>
    %17 = arith.mulf %9, %16 : vector<16x128xf32>
    %18 = arith.truncf %17 : vector<16x128xf32> to vector<16x128xbf16>
    %c1 = arith.constant 1 : index
    %c0_11 = arith.constant 0 : index
    %c0_12 = arith.constant 0 : index
    %19 = vector.load %arg4[%c1, %c0_11, %c0_12] : memref<2x128x128xbf16, #tpu.memory_space<vmem>>, vector<1x128x128xbf16>
    %20 = vector.shape_cast %19 : vector<1x128x128xbf16> to vector<128x128xbf16>
    %cst_13 = arith.constant dense<0.000000e+00> : vector<16x128xf32>
    %21 = tpu.matmul %18, %20, %cst_13 {dimension_numbers = #tpu.dot_dimension_numbers<[1], [0], [0], [1], [0, 0, 1, 1], [], []>} : vector<16x128xbf16>, vector<128x128xbf16>, vector<16x128xf32> -> vector<16x128xf32>
    %c1_14 = arith.constant 1 : index
    %c0_15 = arith.constant 0 : index
    %22 = vector.load %arg5[%c1_14, %c0_15] : memref<2x128xf32, #tpu.memory_space<vmem>>, vector<1x128xf32>
    %23 = vector.broadcast %22 : vector<1x128xf32> to vector<16x128xf32>
    %24 = arith.addf %21, %23 : vector<16x128xf32>
    %c0_16 = arith.constant 0 : index
    %c0_17 = arith.constant 0 : index
    %25 = vector.load %arg3[%c0_16, %c0_17] : memref<16x128xf32, #tpu.memory_space<vmem>>, vector<16x128xf32>
    %26 = arith.truncf %25 : vector<16x128xf32> to vector<16x128xbf16>
    %c0_18 = arith.constant 0 : index
    %c0_19 = arith.constant 0 : index
    %c0_20 = arith.constant 0 : index
    %27 = vector.load %arg6[%c0_18, %c0_19, %c0_20] : memref<2x128x128xbf16, #tpu.memory_space<vmem>>, vector<1x128x128xbf16>
    %28 = vector.shape_cast %27 : vector<1x128x128xbf16> to vector<128x128xbf16>
    %cst_21 = arith.constant dense<0.000000e+00> : vector<16x128xf32>
    %29 = tpu.matmul %26, %28, %cst_21 {dimension_numbers = #tpu.dot_dimension_numbers<[1], [0], [0], [1], [0, 0, 1, 1], [], []>} : vector<16x128xbf16>, vector<128x128xbf16>, vector<16x128xf32> -> vector<16x128xf32>
    %c0_22 = arith.constant 0 : index
    %c0_23 = arith.constant 0 : index
    %30 = vector.load %arg7[%c0_22, %c0_23] : memref<2x128xf32, #tpu.memory_space<vmem>>, vector<1x128xf32>
    %31 = vector.broadcast %30 : vector<1x128xf32> to vector<16x128xf32>
    %32 = arith.addf %29, %31 : vector<16x128xf32>
    %cst_24 = arith.constant 5.000000e-01 : f32
    %33 = vector.broadcast %cst_24 : f32 to vector<16x128xf32>
    %34 = arith.mulf %33, %32 : vector<16x128xf32>
    %35 = math.tanh %34 : vector<16x128xf32>
    %cst_25 = arith.constant 5.000000e-01 : f32
    %36 = vector.broadcast %cst_25 : f32 to vector<16x128xf32>
    %37 = arith.mulf %36, %35 : vector<16x128xf32>
    %cst_26 = arith.constant 5.000000e-01 : f32
    %38 = vector.broadcast %cst_26 : f32 to vector<16x128xf32>
    %39 = arith.addf %37, %38 : vector<16x128xf32>
    %40 = arith.mulf %32, %39 : vector<16x128xf32>
    %41 = arith.truncf %40 : vector<16x128xf32> to vector<16x128xbf16>
    %c1_27 = arith.constant 1 : index
    %c0_28 = arith.constant 0 : index
    %c0_29 = arith.constant 0 : index
    %42 = vector.load %arg6[%c1_27, %c0_28, %c0_29] : memref<2x128x128xbf16, #tpu.memory_space<vmem>>, vector<1x128x128xbf16>
    %43 = vector.shape_cast %42 : vector<1x128x128xbf16> to vector<128x128xbf16>
    %cst_30 = arith.constant dense<0.000000e+00> : vector<16x128xf32>
    %44 = tpu.matmul %41, %43, %cst_30 {dimension_numbers = #tpu.dot_dimension_numbers<[1], [0], [0], [1], [0, 0, 1, 1], [], []>} : vector<16x128xbf16>, vector<128x128xbf16>, vector<16x128xf32> -> vector<16x128xf32>
    %c1_31 = arith.constant 1 : index
    %c0_32 = arith.constant 0 : index
    %45 = vector.load %arg7[%c1_31, %c0_32] : memref<2x128xf32, #tpu.memory_space<vmem>>, vector<1x128xf32>
    %46 = vector.broadcast %45 : vector<1x128xf32> to vector<16x128xf32>
    %47 = arith.addf %44, %46 : vector<16x128xf32>
    %48 = arith.addf %24, %47 : vector<16x128xf32>
    %cst_33 = arith.constant 5.000000e-01 : f32
    %49 = vector.broadcast %cst_33 : f32 to vector<16x128xf32>
    %50 = arith.mulf %49, %48 : vector<16x128xf32>
    %51 = math.tanh %50 : vector<16x128xf32>
    %cst_34 = arith.constant 5.000000e-01 : f32
    %52 = vector.broadcast %cst_34 : f32 to vector<16x128xf32>
    %53 = arith.mulf %52, %51 : vector<16x128xf32>
    %cst_35 = arith.constant 5.000000e-01 : f32
    %54 = vector.broadcast %cst_35 : f32 to vector<16x128xf32>
    %55 = arith.addf %53, %54 : vector<16x128xf32>
    %56 = arith.mulf %48, %55 : vector<16x128xf32>
    %57 = arith.truncf %56 : vector<16x128xf32> to vector<16x128xbf16>
    %58 = arith.truncf %0 : vector<16x128xf32> to vector<16x128xbf16>
    %c0_36 = arith.constant 0 : index
    %c0_37 = arith.constant 0 : index
    %c0_38 = arith.constant 0 : index
    %59 = vector.load %arg8[%c0_36, %c0_37, %c0_38] : memref<4x128x128xbf16, #tpu.memory_space<vmem>>, vector<1x128x128xbf16>
    %60 = vector.shape_cast %59 : vector<1x128x128xbf16> to vector<128x128xbf16>
    %cst_39 = arith.constant dense<0.000000e+00> : vector<16x128xf32>
    %61 = tpu.matmul %58, %60, %cst_39 {dimension_numbers = #tpu.dot_dimension_numbers<[1], [0], [0], [1], [0, 0, 1, 1], [], []>} : vector<16x128xbf16>, vector<128x128xbf16>, vector<16x128xf32> -> vector<16x128xf32>
    %c0_40 = arith.constant 0 : index
    %c0_41 = arith.constant 0 : index
    %c0_42 = arith.constant 0 : index
    %62 = vector.load %arg11[%c0_40, %c0_41, %c0_42] : memref<4x4x128xf32, #tpu.memory_space<vmem>>, vector<1x4x128xf32>
    %63 = vector.shape_cast %62 : vector<1x4x128xf32> to vector<4x128xf32>
    %64 = vector.extract_strided_slice %63 {offsets = [0, 0], sizes = [1, 128], strides = [1, 1]} : vector<4x128xf32> to vector<1x128xf32>
    %65 = vector.broadcast %64 : vector<1x128xf32> to vector<16x128xf32>
    %66 = arith.addf %61, %65 : vector<16x128xf32>
    %c0_43 = arith.constant 0 : index
    %c0_44 = arith.constant 0 : index
    %c0_45 = arith.constant 0 : index
    %67 = vector.load %arg10[%c0_43, %c0_44, %c0_45] : memref<4x128x128xbf16, #tpu.memory_space<vmem>>, vector<1x128x128xbf16>
    %68 = vector.shape_cast %67 : vector<1x128x128xbf16> to vector<128x128xbf16>
    %cst_46 = arith.constant dense<0.000000e+00> : vector<16x128xf32>
    %69 = tpu.matmul %57, %68, %cst_46 {dimension_numbers = #tpu.dot_dimension_numbers<[1], [0], [0], [1], [0, 0, 1, 1], [], []>} : vector<16x128xbf16>, vector<128x128xbf16>, vector<16x128xf32> -> vector<16x128xf32>
    %70 = vector.extract_strided_slice %63 {offsets = [1, 0], sizes = [1, 128], strides = [1, 1]} : vector<4x128xf32> to vector<1x128xf32>
    %71 = vector.broadcast %70 : vector<1x128xf32> to vector<16x128xf32>
    %72 = arith.addf %69, %71 : vector<16x128xf32>
    %cst_47 = arith.constant 1.000000e+00 : f32
    %73 = vector.broadcast %cst_47 : f32 to vector<16x128xf32>
    %74 = arith.addf %73, %72 : vector<16x128xf32>
    %75 = arith.mulf %66, %74 : vector<16x128xf32>
    %cst_48 = arith.constant dense<0.000000e+00> : vector<16xf32>
    %76 = vector.multi_reduction <add>, %75, %cst_48 [1] : vector<16x128xf32> to vector<16xf32>
    %77 = vector.shape_cast %76 : vector<16xf32> to vector<16x1xf32>
    %78 = arith.mulf %75, %75 : vector<16x128xf32>
    %cst_49 = arith.constant dense<0.000000e+00> : vector<16xf32>
    %79 = vector.multi_reduction <add>, %78, %cst_49 [1] : vector<16x128xf32> to vector<16xf32>
    %80 = vector.shape_cast %79 : vector<16xf32> to vector<16x1xf32>
    %cst_50 = arith.constant 1.562500e-02 : f32
    %81 = vector.broadcast %cst_50 : f32 to vector<16x1xf32>
    %82 = arith.mulf %77, %81 : vector<16x1xf32>
    %cst_51 = arith.constant 1.562500e-02 : f32
    %83 = vector.broadcast %cst_51 : f32 to vector<16x1xf32>
    %84 = arith.mulf %80, %83 : vector<16x1xf32>
    %85 = arith.mulf %82, %82 : vector<16x1xf32>
    %86 = arith.subf %84, %85 : vector<16x1xf32>
    %87 = vector.broadcast %82 : vector<16x1xf32> to vector<16x128xf32>
    %88 = arith.subf %75, %87 : vector<16x128xf32>
    %cst_52 = arith.constant 9.99999974E-6 : f32
    %89 = vector.broadcast %cst_52 : f32 to vector<16x1xf32>
    %90 = arith.addf %86, %89 : vector<16x1xf32>
    %91 = math.rsqrt %90 : vector<16x1xf32>
    %92 = vector.broadcast %91 : vector<16x1xf32> to vector<16x128xf32>
    %93 = arith.mulf %88, %92 : vector<16x128xf32>
    %94 = vector.extract_strided_slice %63 {offsets = [2, 0], sizes = [1, 128], strides = [1, 1]} : vector<4x128xf32> to vector<1x128xf32>
    %95 = vector.broadcast %94 : vector<1x128xf32> to vector<16x128xf32>
    %96 = arith.mulf %93, %95 : vector<16x128xf32>
    %97 = vector.extract_strided_slice %63 {offsets = [3, 0], sizes = [1, 128], strides = [1, 1]} : vector<4x128xf32> to vector<1x128xf32>
    %98 = vector.broadcast %97 : vector<1x128xf32> to vector<16x128xf32>
    %99 = arith.addf %96, %98 : vector<16x128xf32>
    %cst_53 = arith.constant 5.000000e-01 : f32
    %100 = vector.broadcast %cst_53 : f32 to vector<16x128xf32>
    %101 = arith.mulf %100, %99 : vector<16x128xf32>
    %102 = math.tanh %101 : vector<16x128xf32>
    %cst_54 = arith.constant 5.000000e-01 : f32
    %103 = vector.broadcast %cst_54 : f32 to vector<16x128xf32>
    %104 = arith.mulf %103, %102 : vector<16x128xf32>
    %cst_55 = arith.constant 5.000000e-01 : f32
    %105 = vector.broadcast %cst_55 : f32 to vector<16x128xf32>
    %106 = arith.addf %104, %105 : vector<16x128xf32>
    %107 = arith.mulf %99, %106 : vector<16x128xf32>
    %108 = arith.truncf %107 : vector<16x128xf32> to vector<16x128xbf16>
    %c1_56 = arith.constant 1 : index
    %c0_57 = arith.constant 0 : index
    %c0_58 = arith.constant 0 : index
    %109 = vector.load %arg8[%c1_56, %c0_57, %c0_58] : memref<4x128x128xbf16, #tpu.memory_space<vmem>>, vector<1x128x128xbf16>
    %110 = vector.shape_cast %109 : vector<1x128x128xbf16> to vector<128x128xbf16>
    %cst_59 = arith.constant dense<0.000000e+00> : vector<16x128xf32>
    %111 = tpu.matmul %108, %110, %cst_59 {dimension_numbers = #tpu.dot_dimension_numbers<[1], [0], [0], [1], [0, 0, 1, 1], [], []>} : vector<16x128xbf16>, vector<128x128xbf16>, vector<16x128xf32> -> vector<16x128xf32>
    %c1_60 = arith.constant 1 : index
    %c0_61 = arith.constant 0 : index
    %c0_62 = arith.constant 0 : index
    %112 = vector.load %arg9[%c1_60, %c0_61, %c0_62] : memref<4x128x128xbf16, #tpu.memory_space<vmem>>, vector<1x128x128xbf16>
    %113 = vector.shape_cast %112 : vector<1x128x128xbf16> to vector<128x128xbf16>
    %cst_63 = arith.constant dense<0.000000e+00> : vector<16x128xf32>
    %114 = tpu.matmul %1, %113, %cst_63 {dimension_numbers = #tpu.dot_dimension_numbers<[1], [0], [0], [1], [0, 0, 1, 1], [], []>} : vector<16x128xbf16>, vector<128x128xbf16>, vector<16x128xf32> -> vector<16x128xf32>
    %115 = arith.addf %111, %114 : vector<16x128xf32>
    %c1_64 = arith.constant 1 : index
    %c0_65 = arith.constant 0 : index
    %c0_66 = arith.constant 0 : index
    %116 = vector.load %arg11[%c1_64, %c0_65, %c0_66] : memref<4x4x128xf32, #tpu.memory_space<vmem>>, vector<1x4x128xf32>
    %117 = vector.shape_cast %116 : vector<1x4x128xf32> to vector<4x128xf32>
    %118 = vector.extract_strided_slice %117 {offsets = [0, 0], sizes = [1, 128], strides = [1, 1]} : vector<4x128xf32> to vector<1x128xf32>
    %119 = vector.broadcast %118 : vector<1x128xf32> to vector<16x128xf32>
    %120 = arith.addf %115, %119 : vector<16x128xf32>
    %c1_67 = arith.constant 1 : index
    %c0_68 = arith.constant 0 : index
    %c0_69 = arith.constant 0 : index
    %121 = vector.load %arg10[%c1_67, %c0_68, %c0_69] : memref<4x128x128xbf16, #tpu.memory_space<vmem>>, vector<1x128x128xbf16>
    %122 = vector.shape_cast %121 : vector<1x128x128xbf16> to vector<128x128xbf16>
    %cst_70 = arith.constant dense<0.000000e+00> : vector<16x128xf32>
    %123 = tpu.matmul %57, %122, %cst_70 {dimension_numbers = #tpu.dot_dimension_numbers<[1], [0], [0], [1], [0, 0, 1, 1], [], []>} : vector<16x128xbf16>, vector<128x128xbf16>, vector<16x128xf32> -> vector<16x128xf32>
    %124 = vector.extract_strided_slice %117 {offsets = [1, 0], sizes = [1, 128], strides = [1, 1]} : vector<4x128xf32> to vector<1x128xf32>
    %125 = vector.broadcast %124 : vector<1x128xf32> to vector<16x128xf32>
    %126 = arith.addf %123, %125 : vector<16x128xf32>
    %cst_71 = arith.constant 1.000000e+00 : f32
    %127 = vector.broadcast %cst_71 : f32 to vector<16x128xf32>
    %128 = arith.addf %127, %126 : vector<16x128xf32>
    %129 = arith.mulf %120, %128 : vector<16x128xf32>
    %cst_72 = arith.constant dense<0.000000e+00> : vector<16xf32>
    %130 = vector.multi_reduction <add>, %129, %cst_72 [1] : vector<16x128xf32> to vector<16xf32>
    %131 = vector.shape_cast %130 : vector<16xf32> to vector<16x1xf32>
    %132 = arith.mulf %129, %129 : vector<16x128xf32>
    %cst_73 = arith.constant dense<0.000000e+00> : vector<16xf32>
    %133 = vector.multi_reduction <add>, %132, %cst_73 [1] : vector<16x128xf32> to vector<16xf32>
    %134 = vector.shape_cast %133 : vector<16xf32> to vector<16x1xf32>
    %cst_74 = arith.constant 1.562500e-02 : f32
    %135 = vector.broadcast %cst_74 : f32 to vector<16x1xf32>
    %136 = arith.mulf %131, %135 : vector<16x1xf32>
    %cst_75 = arith.constant 1.562500e-02 : f32
    %137 = vector.broadcast %cst_75 : f32 to vector<16x1xf32>
    %138 = arith.mulf %134, %137 : vector<16x1xf32>
    %139 = arith.mulf %136, %136 : vector<16x1xf32>
    %140 = arith.subf %138, %139 : vector<16x1xf32>
    %141 = vector.broadcast %136 : vector<16x1xf32> to vector<16x128xf32>
    %142 = arith.subf %129, %141 : vector<16x128xf32>
    %cst_76 = arith.constant 9.99999974E-6 : f32
    %143 = vector.broadcast %cst_76 : f32 to vector<16x1xf32>
    %144 = arith.addf %140, %143 : vector<16x1xf32>
    %145 = math.rsqrt %144 : vector<16x1xf32>
    %146 = vector.broadcast %145 : vector<16x1xf32> to vector<16x128xf32>
    %147 = arith.mulf %142, %146 : vector<16x128xf32>
    %148 = vector.extract_strided_slice %117 {offsets = [2, 0], sizes = [1, 128], strides = [1, 1]} : vector<4x128xf32> to vector<1x128xf32>
    %149 = vector.broadcast %148 : vector<1x128xf32> to vector<16x128xf32>
    %150 = arith.mulf %147, %149 : vector<16x128xf32>
    %151 = vector.extract_strided_slice %117 {offsets = [3, 0], sizes = [1, 128], strides = [1, 1]} : vector<4x128xf32> to vector<1x128xf32>
    %152 = vector.broadcast %151 : vector<1x128xf32> to vector<16x128xf32>
    %153 = arith.addf %150, %152 : vector<16x128xf32>
    %cst_77 = arith.constant 5.000000e-01 : f32
    %154 = vector.broadcast %cst_77 : f32 to vector<16x128xf32>
    %155 = arith.mulf %154, %153 : vector<16x128xf32>
    %156 = math.tanh %155 : vector<16x128xf32>
    %cst_78 = arith.constant 5.000000e-01 : f32
    %157 = vector.broadcast %cst_78 : f32 to vector<16x128xf32>
    %158 = arith.mulf %157, %156 : vector<16x128xf32>
    %cst_79 = arith.constant 5.000000e-01 : f32
    %159 = vector.broadcast %cst_79 : f32 to vector<16x128xf32>
    %160 = arith.addf %158, %159 : vector<16x128xf32>
    %161 = arith.mulf %153, %160 : vector<16x128xf32>
    %162 = arith.truncf %161 : vector<16x128xf32> to vector<16x128xbf16>
    %c2 = arith.constant 2 : index
    %c0_80 = arith.constant 0 : index
    %c0_81 = arith.constant 0 : index
    %163 = vector.load %arg8[%c2, %c0_80, %c0_81] : memref<4x128x128xbf16, #tpu.memory_space<vmem>>, vector<1x128x128xbf16>
    %164 = vector.shape_cast %163 : vector<1x128x128xbf16> to vector<128x128xbf16>
    %cst_82 = arith.constant dense<0.000000e+00> : vector<16x128xf32>
    %165 = tpu.matmul %162, %164, %cst_82 {dimension_numbers = #tpu.dot_dimension_numbers<[1], [0], [0], [1], [0, 0, 1, 1], [], []>} : vector<16x128xbf16>, vector<128x128xbf16>, vector<16x128xf32> -> vector<16x128xf32>
    %c2_83 = arith.constant 2 : index
    %c0_84 = arith.constant 0 : index
    %c0_85 = arith.constant 0 : index
    %166 = vector.load %arg9[%c2_83, %c0_84, %c0_85] : memref<4x128x128xbf16, #tpu.memory_space<vmem>>, vector<1x128x128xbf16>
    %167 = vector.shape_cast %166 : vector<1x128x128xbf16> to vector<128x128xbf16>
    %cst_86 = arith.constant dense<0.000000e+00> : vector<16x128xf32>
    %168 = tpu.matmul %1, %167, %cst_86 {dimension_numbers = #tpu.dot_dimension_numbers<[1], [0], [0], [1], [0, 0, 1, 1], [], []>} : vector<16x128xbf16>, vector<128x128xbf16>, vector<16x128xf32> -> vector<16x128xf32>
    %169 = arith.addf %165, %168 : vector<16x128xf32>
    %c2_87 = arith.constant 2 : index
    %c0_88 = arith.constant 0 : index
    %c0_89 = arith.constant 0 : index
    %170 = vector.load %arg11[%c2_87, %c0_88, %c0_89] : memref<4x4x128xf32, #tpu.memory_space<vmem>>, vector<1x4x128xf32>
    %171 = vector.shape_cast %170 : vector<1x4x128xf32> to vector<4x128xf32>
    %172 = vector.extract_strided_slice %171 {offsets = [0, 0], sizes = [1, 128], strides = [1, 1]} : vector<4x128xf32> to vector<1x128xf32>
    %173 = vector.broadcast %172 : vector<1x128xf32> to vector<16x128xf32>
    %174 = arith.addf %169, %173 : vector<16x128xf32>
    %c2_90 = arith.constant 2 : index
    %c0_91 = arith.constant 0 : index
    %c0_92 = arith.constant 0 : index
    %175 = vector.load %arg10[%c2_90, %c0_91, %c0_92] : memref<4x128x128xbf16, #tpu.memory_space<vmem>>, vector<1x128x128xbf16>
    %176 = vector.shape_cast %175 : vector<1x128x128xbf16> to vector<128x128xbf16>
    %cst_93 = arith.constant dense<0.000000e+00> : vector<16x128xf32>
    %177 = tpu.matmul %57, %176, %cst_93 {dimension_numbers = #tpu.dot_dimension_numbers<[1], [0], [0], [1], [0, 0, 1, 1], [], []>} : vector<16x128xbf16>, vector<128x128xbf16>, vector<16x128xf32> -> vector<16x128xf32>
    %178 = vector.extract_strided_slice %171 {offsets = [1, 0], sizes = [1, 128], strides = [1, 1]} : vector<4x128xf32> to vector<1x128xf32>
    %179 = vector.broadcast %178 : vector<1x128xf32> to vector<16x128xf32>
    %180 = arith.addf %177, %179 : vector<16x128xf32>
    %cst_94 = arith.constant 1.000000e+00 : f32
    %181 = vector.broadcast %cst_94 : f32 to vector<16x128xf32>
    %182 = arith.addf %181, %180 : vector<16x128xf32>
    %183 = arith.mulf %174, %182 : vector<16x128xf32>
    %cst_95 = arith.constant dense<0.000000e+00> : vector<16xf32>
    %184 = vector.multi_reduction <add>, %183, %cst_95 [1] : vector<16x128xf32> to vector<16xf32>
    %185 = vector.shape_cast %184 : vector<16xf32> to vector<16x1xf32>
    %186 = arith.mulf %183, %183 : vector<16x128xf32>
    %cst_96 = arith.constant dense<0.000000e+00> : vector<16xf32>
    %187 = vector.multi_reduction <add>, %186, %cst_96 [1] : vector<16x128xf32> to vector<16xf32>
    %188 = vector.shape_cast %187 : vector<16xf32> to vector<16x1xf32>
    %cst_97 = arith.constant 1.562500e-02 : f32
    %189 = vector.broadcast %cst_97 : f32 to vector<16x1xf32>
    %190 = arith.mulf %185, %189 : vector<16x1xf32>
    %cst_98 = arith.constant 1.562500e-02 : f32
    %191 = vector.broadcast %cst_98 : f32 to vector<16x1xf32>
    %192 = arith.mulf %188, %191 : vector<16x1xf32>
    %193 = arith.mulf %190, %190 : vector<16x1xf32>
    %194 = arith.subf %192, %193 : vector<16x1xf32>
    %195 = vector.broadcast %190 : vector<16x1xf32> to vector<16x128xf32>
    %196 = arith.subf %183, %195 : vector<16x128xf32>
    %cst_99 = arith.constant 9.99999974E-6 : f32
    %197 = vector.broadcast %cst_99 : f32 to vector<16x1xf32>
    %198 = arith.addf %194, %197 : vector<16x1xf32>
    %199 = math.rsqrt %198 : vector<16x1xf32>
    %200 = vector.broadcast %199 : vector<16x1xf32> to vector<16x128xf32>
    %201 = arith.mulf %196, %200 : vector<16x128xf32>
    %202 = vector.extract_strided_slice %171 {offsets = [2, 0], sizes = [1, 128], strides = [1, 1]} : vector<4x128xf32> to vector<1x128xf32>
    %203 = vector.broadcast %202 : vector<1x128xf32> to vector<16x128xf32>
    %204 = arith.mulf %201, %203 : vector<16x128xf32>
    %205 = vector.extract_strided_slice %171 {offsets = [3, 0], sizes = [1, 128], strides = [1, 1]} : vector<4x128xf32> to vector<1x128xf32>
    %206 = vector.broadcast %205 : vector<1x128xf32> to vector<16x128xf32>
    %207 = arith.addf %204, %206 : vector<16x128xf32>
    %cst_100 = arith.constant 5.000000e-01 : f32
    %208 = vector.broadcast %cst_100 : f32 to vector<16x128xf32>
    %209 = arith.mulf %208, %207 : vector<16x128xf32>
    %210 = math.tanh %209 : vector<16x128xf32>
    %cst_101 = arith.constant 5.000000e-01 : f32
    %211 = vector.broadcast %cst_101 : f32 to vector<16x128xf32>
    %212 = arith.mulf %211, %210 : vector<16x128xf32>
    %cst_102 = arith.constant 5.000000e-01 : f32
    %213 = vector.broadcast %cst_102 : f32 to vector<16x128xf32>
    %214 = arith.addf %212, %213 : vector<16x128xf32>
    %215 = arith.mulf %207, %214 : vector<16x128xf32>
    %216 = arith.truncf %215 : vector<16x128xf32> to vector<16x128xbf16>
    %c3 = arith.constant 3 : index
    %c0_103 = arith.constant 0 : index
    %c0_104 = arith.constant 0 : index
    %217 = vector.load %arg8[%c3, %c0_103, %c0_104] : memref<4x128x128xbf16, #tpu.memory_space<vmem>>, vector<1x128x128xbf16>
    %218 = vector.shape_cast %217 : vector<1x128x128xbf16> to vector<128x128xbf16>
    %cst_105 = arith.constant dense<0.000000e+00> : vector<16x128xf32>
    %219 = tpu.matmul %216, %218, %cst_105 {dimension_numbers = #tpu.dot_dimension_numbers<[1], [0], [0], [1], [0, 0, 1, 1], [], []>} : vector<16x128xbf16>, vector<128x128xbf16>, vector<16x128xf32> -> vector<16x128xf32>
    %c3_106 = arith.constant 3 : index
    %c0_107 = arith.constant 0 : index
    %c0_108 = arith.constant 0 : index
    %220 = vector.load %arg9[%c3_106, %c0_107, %c0_108] : memref<4x128x128xbf16, #tpu.memory_space<vmem>>, vector<1x128x128xbf16>
    %221 = vector.shape_cast %220 : vector<1x128x128xbf16> to vector<128x128xbf16>
    %cst_109 = arith.constant dense<0.000000e+00> : vector<16x128xf32>
    %222 = tpu.matmul %1, %221, %cst_109 {dimension_numbers = #tpu.dot_dimension_numbers<[1], [0], [0], [1], [0, 0, 1, 1], [], []>} : vector<16x128xbf16>, vector<128x128xbf16>, vector<16x128xf32> -> vector<16x128xf32>
    %223 = arith.addf %219, %222 : vector<16x128xf32>
    %c3_110 = arith.constant 3 : index
    %c0_111 = arith.constant 0 : index
    %c0_112 = arith.constant 0 : index
    %224 = vector.load %arg11[%c3_110, %c0_111, %c0_112] : memref<4x4x128xf32, #tpu.memory_space<vmem>>, vector<1x4x128xf32>
    %225 = vector.shape_cast %224 : vector<1x4x128xf32> to vector<4x128xf32>
    %226 = vector.extract_strided_slice %225 {offsets = [0, 0], sizes = [1, 128], strides = [1, 1]} : vector<4x128xf32> to vector<1x128xf32>
    %227 = vector.broadcast %226 : vector<1x128xf32> to vector<16x128xf32>
    %228 = arith.addf %223, %227 : vector<16x128xf32>
    %c0_113 = arith.constant 0 : index
    %c0_114 = arith.constant 0 : index
    %229 = vector.load %arg12[%c0_113, %c0_114] : memref<16x128xf32, #tpu.memory_space<vmem>>, vector<16x128xf32>
    tpu.vector_store %arg12[%c0_113, %c0_114], %228 {strides = array<i32>} : memref<16x128xf32, #tpu.memory_space<vmem>>, vector<16x128xf32>,
    return
  }
  func.func @transform_0(%arg0: i32) -> (i32, i32) {
    %c0_i32 = arith.constant 0 : i32
    %c0_i32_0 = arith.constant 0 : i32
    return %arg0, %c0_i32 : i32, i32
  }
  func.func @transform_1(%arg0: i32) -> (i32, i32) {
    %c0_i32 = arith.constant 0 : i32
    %c0_i32_0 = arith.constant 0 : i32
    return %arg0, %c0_i32 : i32, i32
  }
  func.func @transform_2(%arg0: i32) -> (i32, i32) {
    %c0_i32 = arith.constant 0 : i32
    %c0_i32_0 = arith.constant 0 : i32
    return %arg0, %c0_i32 : i32, i32
  }
  func.func @transform_3(%arg0: i32) -> (i32, i32, i32) {
    %c0_i32 = arith.constant 0 : i32
    %c0_i32_0 = arith.constant 0 : i32
    %c0_i32_1 = arith.constant 0 : i32
    %c0_i32_2 = arith.constant 0 : i32
    return %c0_i32, %c0_i32_0, %c0_i32_1 : i32, i32, i32
  }
  func.func @transform_4(%arg0: i32) -> (i32, i32) {
    %c0_i32 = arith.constant 0 : i32
    %c0_i32_0 = arith.constant 0 : i32
    %c0_i32_1 = arith.constant 0 : i32
    return %c0_i32, %c0_i32_0 : i32, i32
  }
  func.func @transform_5(%arg0: i32) -> (i32, i32, i32) {
    %c0_i32 = arith.constant 0 : i32
    %c0_i32_0 = arith.constant 0 : i32
    %c0_i32_1 = arith.constant 0 : i32
    %c0_i32_2 = arith.constant 0 : i32
    return %c0_i32, %c0_i32_0, %c0_i32_1 : i32, i32, i32
  }
  func.func @transform_6(%arg0: i32) -> (i32, i32) {
    %c0_i32 = arith.constant 0 : i32
    %c0_i32_0 = arith.constant 0 : i32
    %c0_i32_1 = arith.constant 0 : i32
    return %c0_i32, %c0_i32_0 : i32, i32
  }
  func.func @transform_7(%arg0: i32) -> (i32, i32, i32) {
    %c0_i32 = arith.constant 0 : i32
    %c0_i32_0 = arith.constant 0 : i32
    %c0_i32_1 = arith.constant 0 : i32
    %c0_i32_2 = arith.constant 0 : i32
    return %c0_i32, %c0_i32_0, %c0_i32_1 : i32, i32, i32
  }
  func.func @transform_8(%arg0: i32) -> (i32, i32, i32) {
    %c0_i32 = arith.constant 0 : i32
    %c0_i32_0 = arith.constant 0 : i32
    %c0_i32_1 = arith.constant 0 : i32
    %c0_i32_2 = arith.constant 0 : i32
    return %c0_i32, %c0_i32_0, %c0_i32_1 : i32, i32, i32
  }
  func.func @transform_9(%arg0: i32) -> (i32, i32, i32) {
    %c0_i32 = arith.constant 0 : i32
    %c0_i32_0 = arith.constant 0 : i32
    %c0_i32_1 = arith.constant 0 : i32
    %c0_i32_2 = arith.constant 0 : i32
    return %c0_i32, %c0_i32_0, %c0_i32_1 : i32, i32, i32
  }
  func.func @transform_10(%arg0: i32) -> (i32, i32, i32) {
    %c0_i32 = arith.constant 0 : i32
    %c0_i32_0 = arith.constant 0 : i32
    %c0_i32_1 = arith.constant 0 : i32
    %c0_i32_2 = arith.constant 0 : i32
    return %c0_i32, %c0_i32_0, %c0_i32_1 : i32, i32, i32
  }
  func.func @transform_11(%arg0: i32) -> (i32, i32) {
    %c0_i32 = arith.constant 0 : i32
    %c0_i32_0 = arith.constant 0 : i32
    return %arg0, %c0_i32 : i32, i32
  }
}

</mosaic_0001>

<bundles_post_ra>
// kernel: latent_mlp_matcher_forward.1
= control target key start
LH: loop header
LB: loop body
LE: loop exit
PB: predicated region body
PF: predicated region fallthrough
CT: control target
= control target key end

     0   :  { %s2685_s3 = inlined_call_operand.vmem [shape: bf16[2,128,128], index: 3, kind: input, shape index: {}]   ;;  %s2686_s5 = inlined_call_operand.vmem [shape: bf16[2,128,128], index: 5, kind: input, shape index: {}]   ;;  %s2687_s4 = inlined_call_operand.vmem [shape: f32[2,128], index: 4, kind: input, shape index: {}]   ;;  %s2688_s1 = inlined_call_operand.vmem [shape: f32[16,128], index: 1, kind: input, shape index: {}]   ;;  %s2689_s2 = inlined_call_operand.vmem [shape: f32[16,128], index: 2, kind: input, shape index: {}]   ;;  %s2690_s6 = inlined_call_operand.vmem [shape: f32[2,128], index: 6, kind: input, shape index: {}]   ;;  %s2691_s7 = inlined_call_operand.vmem [shape: bf16[4,128,128], index: 7, kind: input, shape index: {}]   ;;  %s2692_s9 = inlined_call_operand.vmem [shape: bf16[4,128,128], index: 9, kind: input, shape index: {}]   ;;  %s2693_s0 = inlined_call_operand.vmem [shape: f32[16,128], index: 0, kind: input, shape index: {}]   ;;  %s2694_s10 = inlined_call_operand.vmem [shape: f32[4,4,128], index: 10, kind: input, shape index: {}]   ;;  %s2695_s8 = inlined_call_operand.vmem [shape: bf16[4,128,128], index: 8, kind: input, shape index: {}]   ;;  %s2696_s11 = inlined_call_operand.vmem [shape: f32[16,128], index: 11, kind: output, shape index: {}]  }
   0x1   :  { %v2031_v0 = vld [vmem:[%s2685_s3 + $0x38] sm:$0xff]  ;;  %v2030_v2 = vld [vmem:[%s2685_s3 + $0x30] sm:$0xff]  ;;  %v2029_v4 = vld [vmem:[%s2685_s3 + $0x28] sm:$0xff] }
   0x2   :  { %v2047_v1 = vld [vmem:[%s2686_s5 + $0x38] sm:$0xff]  ;;  %110 = vmatpush.bf16.msra.mxu0 %v2031_v0  ;;  %v2046_v3 = vld [vmem:[%s2686_s5 + $0x30] sm:$0xff]  ;;  %v2045_v5 = vld [vmem:[%s2686_s5 + $0x28] sm:$0xff] }
   0x3   :  { %285 = vmatpush.bf16.msra.mxu2 %v2047_v1  ;;  %v2039_v6 = vld [vmem:[%s2685_s3 + $0x78] sm:$0xff]  ;;  %v2028_v7 = vld [vmem:[%s2685_s3 + $0x20] sm:$0xff]  ;;  %v2026_v11 = vld [vmem:[%s2685_s3 + $0x10] sm:$0xff] }
   0x4   :  { %202 = vmatpush.bf16.msra.mxu1 %v2039_v6  ;;  %v2044_v8 = vld [vmem:[%s2686_s5 + $0x20] sm:$0xff]  ;;  %v2027_v9 = vld [vmem:[%s2685_s3 + $0x18] sm:$0xff]  ;;  %v2042_v12 = vld [vmem:[%s2686_s5 + $0x10] sm:$0xff] }
   0x5   :  { %v2043_v10 = vld [vmem:[%s2686_s5 + $0x18] sm:$0xff]  ;;  %v2025_v13 = vld [vmem:[%s2685_s3 + $0x8] sm:$0xff]  ;;  %v2024_v15 = vld [vmem:[%s2685_s3] sm:$0xff] }
   0x6   :  { %111 = vmatpush.bf16.msra.mxu0 %v2030_v2  ;;  %v2041_v14 = vld [vmem:[%s2686_s5 + $0x8] sm:$0xff]  ;;  %v2040_v16 = vld [vmem:[%s2686_s5] sm:$0xff]  ;;  %v2038_v23 = vld [vmem:[%s2685_s3 + $0x70] sm:$0xff] }
   0x7   :  { %286 = vmatpush.bf16.msra.mxu2 %v2046_v3  ;;  %v41_v17 = vld [vmem:[%s2688_s1] sm:$0xff]  ;;  %v42_v18 = vld [vmem:[%s2688_s1 + $0x8] sm:$0xff]  ;;  %v2055_v24 = vld [vmem:[%s2686_s5 + $0x78] sm:$0xff] }
   0x8   :  { %v216_v19 = vld [vmem:[%s2689_s2] sm:$0xff]  ;;  %v217_v20 = vld [vmem:[%s2689_s2 + $0x8] sm:$0xff]  ;;  %v43_v21 = vpack.c.bf16 %v42_v18, %v41_v17  ;;  %203 = vmatpush.bf16.msra.mxu1 %v2038_v23  ;;  %377 = vmatpush.bf16.msra.mxu3 %v2055_v24  ;;  %v2054_v26 = vld [vmem:[%s2686_s5 + $0x70] sm:$0xff] }
   0x9   :  { %v218_v22 = vpack.c.bf16 %v217_v20, %v216_v19  ;;  %v2037_v25 = vld [vmem:[%s2685_s3 + $0x68] sm:$0xff]  ;;  %v2036_v27 = vld [vmem:[%s2685_s3 + $0x60] sm:$0xff]  ;;  %v2035_v29 = vld [vmem:[%s2685_s3 + $0x58] sm:$0xff] }
   0xa   :  { %112 = vmatpush.bf16.msra.mxu0 %v2029_v4  ;;  %v2053_v28 = vld [vmem:[%s2686_s5 + $0x68] sm:$0xff]  ;;  %v2052_v30 = vld [vmem:[%s2686_s5 + $0x60] sm:$0xff]  ;;  %v2034_v31 = vld [vmem:[%s2685_s3 + $0x50] sm:$0xff] }
   0xb   :  { %287 = vmatpush.bf16.msra.mxu2 %v2045_v5  ;;  %v2051_v32 = vld [vmem:[%s2686_s5 + $0x58] sm:$0xff]  ;;  %v2033_v33 = vld [vmem:[%s2685_s3 + $0x48] sm:$0xff]  ;;  %v2050_v34 = vld [vmem:[%s2686_s5 + $0x50] sm:$0xff] }
   0xc   :  { %204 = vmatpush.bf16.msra.mxu1 %v2037_v25  ;;  %378 = vmatpush.bf16.msra.mxu3 %v2054_v26  ;;  %v2032_v35 = vld [vmem:[%s2685_s3 + $0x40] sm:$0xff]  ;;  %v2049_v36 = vld [vmem:[%s2686_s5 + $0x48] sm:$0xff]  ;;  %v2063_v41 = vld [vmem:[%s2691_s7 + $0x38] sm:$0xff] }
   0xd   :  { %v2136_v37 = vld [vmem:[%s2687_s4] ss:$0 sm:$0xff]  ;;  %v2062_v44 = vld [vmem:[%s2691_s7 + $0x30] sm:$0xff]  ;;  %v2061_v48 = vld [vmem:[%s2691_s7 + $0x28] sm:$0xff] }
   0xe   :  { %113 = vmatpush.bf16.msra.mxu0 %v2028_v7  ;;  %v2048_v38 = vld [vmem:[%s2686_s5 + $0x40] sm:$0xff]  ;;  %v2059_v57 = vld [vmem:[%s2691_s7 + $0x18] sm:$0xff]  ;;  %v2094_v17 = vld [vmem:[%s2692_s9 + $0x70] sm:$0xff] }
   0xf   :  { %288 = vmatpush.bf16.msra.mxu2 %v2044_v8  ;;  %v2137_v43 = vld [vmem:[%s2690_s6] ss:$0 sm:$0xff]  ;;  %v2069_v18 = vld [vmem:[%s2692_s9 + $0x28] sm:$0xff]  ;;  %v2067_v25 = vld [vmem:[%s2692_s9 + $0x18] sm:$0xff] }
  0x10   :  { %205 = vmatpush.bf16.msra.mxu1 %v2036_v27  ;;  %379 = vmatpush.bf16.msra.mxu3 %v2053_v28  ;;  %v2060_v52 = vld [vmem:[%s2691_s7 + $0x20] sm:$0xff]  ;;  %v2093_v19 = vld [vmem:[%s2692_s9 + $0x68] sm:$0xff]  ;;  %v2091_v26 = vld [vmem:[%s2692_s9 + $0x58] sm:$0xff] }
  0x11   :  { %v2068_v20 = vld [vmem:[%s2692_s9 + $0x20] sm:$0xff]  ;;  %v39_v23 = vld [vmem:[%s2693_s0 + $0x8] sm:$0xff]  ;;  %v2066_v27 = vld [vmem:[%s2692_s9 + $0x10] sm:$0xff] }
  0x12   :  { %114 = vmatpush.bf16.msra.mxu0 %v2027_v9  ;;  %v2090_v28 = vld [vmem:[%s2692_s9 + $0x50] sm:$0xff] }
  0x13   :  { %289 = vmatpush.bf16.msra.mxu2 %v2043_v10 }
  0x14   :  { %206 = vmatpush.bf16.msra.mxu1 %v2035_v29  ;;  %380 = vmatpush.bf16.msra.mxu3 %v2052_v30  ;;  %v2065_v29 = vld [vmem:[%s2692_s9 + $0x8] sm:$0xff] }
  0x15   :  { %v2089_v30 = vld [vmem:[%s2692_s9 + $0x48] sm:$0xff] }
  0x16   :  { %115 = vmatpush.bf16.msra.mxu0 %v2026_v11  ;;  %v2058_v11 = vld [vmem:[%s2691_s7 + $0x10] sm:$0xff] }
  0x17   :  { %290 = vmatpush.bf16.msra.mxu2 %v2042_v12  ;;  %v2057_v12 = vld [vmem:[%s2691_s7 + $0x8] sm:$0xff] }
  0x18   :  { %207 = vmatpush.bf16.msra.mxu1 %v2034_v31  ;;  %381 = vmatpush.bf16.msra.mxu3 %v2051_v32  ;;  %v2064_v31 = vld [vmem:[%s2692_s9] sm:$0xff] }
  0x19   :  { %v2088_v32 = vld [vmem:[%s2692_s9 + $0x40] sm:$0xff] }
  0x1a   :  { %116 = vmatpush.bf16.msra.mxu0 %v2025_v13  ;;  %v2056_v13 = vld [vmem:[%s2691_s7] sm:$0xff] }
  0x1b   :  { %291 = vmatpush.bf16.msra.mxu2 %v2041_v14  ;;  %v2071_v14 = vld [vmem:[%s2692_s9 + $0x38] sm:$0xff] }
  0x1c   :  { %208 = vmatpush.bf16.msra.mxu1 %v2033_v33  ;;  %382 = vmatpush.bf16.msra.mxu3 %v2050_v34  ;;  %v2138_v34 = vld [vmem:[%s2687_s4 + $0x1] ss:$0 sm:$0xff] }
  0x1e   :  { %117 = vmatpush.bf16.msra.mxu0 %v2024_v15  ;;  %v2095_v15 = vld [vmem:[%s2692_s9 + $0x78] sm:$0xff] }
  0x1f   :  { %292 = vmatpush.bf16.msra.mxu2 %v2040_v16  ;;  %v2070_v16 = vld [vmem:[%s2692_s9 + $0x30] sm:$0xff] }
  0x20   :  { %209 = vmatpush.bf16.msra.mxu1 %v2032_v35  ;;  %383 = vmatpush.bf16.msra.mxu3 %v2049_v36  ;;  %v2139_v35 = vld [vmem:[%s2690_s6 + $0x1] ss:$0 sm:$0xff] }
  0x21   :  { %118 = vmatmul.bf16.vlgmr.msra.gmra.mxu0 %v43_v21  ;;  %v2092_v21 = vld [vmem:[%s2692_s9 + $0x60] sm:$0xff] }
  0x22   :  { %293 = vmatmul.bf16.vlgmr.msra.gmra.mxu2 %v218_v22  ;;  %470 = vmatpush.bf16.msrb.mxu0 %v2063_v41  ;;  %v38_v22 = vld [vmem:[%s2693_s0] sm:$0xff] }
  0x23   :  { %v2404_v24 = vpack.c.bf16 %v39_v23, %v38_v22 }
  0x24   :  { %384 = vmatpush.bf16.msra.mxu3 %v2048_v38  ;;  %549 = vmatpush.bf16.msrb.mxu1 %v2071_v14  ;;  %v2076_v14 = vld [vmem:[%s2691_s7 + $0x60] sm:$0xff] }
  0x26   :  { %471 = vmatpush.bf16.msrb.mxu0 %v2062_v44 }
  0x28   :  { %550 = vmatpush.bf16.msrb.mxu1 %v2070_v16  ;;  %v2075_v16 = vld [vmem:[%s2691_s7 + $0x58] sm:$0xff] }
  0x2a   :  { %472 = vmatpush.bf16.msrb.mxu0 %v2061_v48 }
  0x2c   :  { %551 = vmatpush.bf16.msrb.mxu1 %v2069_v18 }
  0x2e   :  { %473 = vmatpush.bf16.msrb.mxu0 %v2060_v52 }
  0x30   :  { %552 = vmatpush.bf16.msrb.mxu1 %v2068_v20 }
  0x32   :  { %474 = vmatpush.bf16.msrb.mxu0 %v2059_v57 }
  0x34   :  { %553 = vmatpush.bf16.msrb.mxu1 %v2067_v25 }
  0x36   :  { %475 = vmatpush.bf16.msrb.mxu0 %v2058_v11  ;;  %v2087_v11 = vld [vmem:[%s2695_s8 + $0x78] sm:$0xff] }
  0x37   :  { %710 = vmatpush.bf16.msrb.mxu2 %v2087_v11 }
  0x38   :  { %554 = vmatpush.bf16.msrb.mxu1 %v2066_v27  ;;  %v2082_v27 = vld [vmem:[%s2695_s8 + $0x50] sm:$0xff] }
  0x3a   :  { %476 = vmatpush.bf16.msrb.mxu0 %v2057_v12  ;;  %v2077_v12 = vld [vmem:[%s2691_s7 + $0x68] sm:$0xff] }
  0x3c   :  { %555 = vmatpush.bf16.msrb.mxu1 %v2065_v29  ;;  %v2072_v29 = vld [vmem:[%s2691_s7 + $0x40] sm:$0xff] }
  0x3e   :  { %477 = vmatpush.bf16.msrb.mxu0 %v2056_v13  ;;  %v2086_v13 = vld [vmem:[%s2695_s8 + $0x70] sm:$0xff] }
  0x3f   :  { %711 = vmatpush.bf16.msrb.mxu2 %v2086_v13 }
  0x40   :  { %556 = vmatpush.bf16.msrb.mxu1 %v2064_v31  ;;  %v2081_v31 = vld [vmem:[%s2695_s8 + $0x48] sm:$0xff] }
  0x41   :  { %478 = vmatmul.bf16.vlgmr.msrb.gmra.mxu0 %v2404_v24 }
  0x42   :  { %857 = vmatpush.bf16.msra.mxu0 %v2095_v15  ;;  %v2085_v15 = vld [vmem:[%s2695_s8 + $0x68] sm:$0xff] }
  0x43   :  { %712 = vmatpush.bf16.msrb.mxu2 %v2085_v15 }
  0x46   :  { %858 = vmatpush.bf16.msra.mxu0 %v2094_v17  ;;  %v2084_v17 = vld [vmem:[%s2695_s8 + $0x60] sm:$0xff] }
  0x47   :  { %713 = vmatpush.bf16.msrb.mxu2 %v2084_v17 }
  0x4a   :  { %859 = vmatpush.bf16.msra.mxu0 %v2093_v19  ;;  %v2074_v19 = vld [vmem:[%s2691_s7 + $0x50] sm:$0xff] }
  0x4e   :  { %860 = vmatpush.bf16.msra.mxu0 %v2092_v21  ;;  %v2083_v21 = vld [vmem:[%s2695_s8 + $0x58] sm:$0xff] }
  0x4f   :  { %714 = vmatpush.bf16.msrb.mxu2 %v2083_v21 }
  0x52   :  { %861 = vmatpush.bf16.msra.mxu0 %v2091_v26  ;;  %v2073_v26 = vld [vmem:[%s2691_s7 + $0x48] sm:$0xff] }
  0x53   :  { %715 = vmatpush.bf16.msrb.mxu2 %v2082_v27 }
  0x56   :  { %862 = vmatpush.bf16.msra.mxu0 %v2090_v28 }
  0x57   :  { %716 = vmatpush.bf16.msrb.mxu2 %v2081_v31 }
  0x5a   :  { %863 = vmatpush.bf16.msra.mxu0 %v2089_v30 }
  0x5e   :  { %864 = vmatpush.bf16.msra.mxu0 %v2088_v32  ;;  %v2119_v32 = vld [vmem:[%s2692_s9 + $0xb8] sm:$0xff] }
  0x9e   :  { %v119_v39 = vpop.f32.mrf.mxu0 }
  0x9f   :  { %v120_v40 = vadd.f32 %v2136_v37, %v119_v39 }
  0xa1   :  { %v124_v42 = vmul.f32 0.5, %v120_v40 }
  0xa3   :  { %2140 = vtanh.f32 %v124_v42 }
  0xa5   :  { %v294_v45 = vpop.f32.mrf.mxu2 }
  0xa6   :  { %v295_v46 = vadd.f32 %v2137_v43, %v294_v45  ;;  %v121_v47 = vpop.f32.mrf.mxu0 }
  0xa7   :  { %v122_v50 = vadd.f32 %v2136_v37, %v121_v47 }
  0xa8   :  { %v299_v49 = vmul.f32 0.5, %v295_v46 }
  0xa9   :  { %v125_v51 = vmul.f32 0.5, %v122_v50  ;;  %v2141_v53 = vpop.eup %2140 }
  0xaa   :  { %2142 = vtanh.f32 %v299_v49  ;;  %v128_v56 = vmul.f32 0.5, %v2141_v53 }
  0xab   :  { %2144 = vtanh.f32 %v125_v51 }
  0xac   :  { %v130_v61 = vadd.f32 0.5, %v128_v56  ;;  %v2444_v56 = vld [vmem:[%s2694_s10] sm:$0xf] }
  0xad   :  { %v296_v54 = vpop.f32.mrf.mxu2  ;;  %v421_v57 = vperm.slane %v2444_v56, 0 }
  0xae   :  { %v297_v55 = vadd.f32 %v2137_v43, %v296_v54  ;;  %v132_v1 = vmul.f32 %v130_v61, %v120_v40 }
  0xb0   :  { %v300_v58 = vmul.f32 0.5, %v297_v55  ;;  %v2143_v59 = vpop.eup %2142 }
  0xb1   :  { %v2145_v60 = vpop.eup %2144  ;;  %v303_v63 = vmul.f32 0.5, %v2143_v59 }
  0xb2   :  { %2146 = vtanh.f32 %v300_v58  ;;  %v129_v62 = vmul.f32 0.5, %v2145_v60  ;;  %v500_v58 = vperm.slane %v2444_v56, 1 }
  0xb3   :  { %v305_v4 = vadd.f32 0.5, %v303_v63 }
  0xb4   :  { %v131_v0 = vadd.f32 0.5, %v129_v62 }
  0xb5   :  { %v307_v8 = vmul.f32 %v305_v4, %v295_v46 }
  0xb6   :  { %v133_v2 = vmul.f32 %v131_v0, %v122_v50 }
  0xb8   :  { %v2147_v3 = vpop.eup %2146  ;;  %v134_v6 = vpack.c.bf16 %v133_v2, %v132_v1 }
  0xb9   :  { %v304_v5 = vmul.f32 0.5, %v2147_v3 }
  0xba   :  { %210 = vmatmul.bf16.vlgmr.msra.gmra.mxu1 %v134_v6 }
  0xbb   :  { %v306_v7 = vadd.f32 0.5, %v304_v5 }
  0xbd   :  { %v308_v9 = vmul.f32 %v306_v7, %v297_v55 }
  0xbe   :  { %v479_v59 = vpop.f32.mrf.mxu0 }
  0xbf   :  { %v309_v10 = vpack.c.bf16 %v308_v9, %v307_v8  ;;  %v480_v61 = vadd.f32 %v479_v59, %v421_v57  ;;  %v2079_v9 = vld [vmem:[%s2691_s7 + $0x78] sm:$0xff] }
  0xc0   :  { %772 = vmatpush.bf16.msrb.mxu3 %v2079_v9 }
  0xc1   :  { %385 = vmatmul.bf16.vlgmr.msra.gmra.mxu3 %v309_v10  ;;  %v2078_v10 = vld [vmem:[%s2691_s7 + $0x70] sm:$0xff] }
  0xc4   :  { %773 = vmatpush.bf16.msrb.mxu3 %v2078_v10 }
  0xc6   :  { %v481_v4 = vpop.f32.mrf.mxu0 }
  0xc7   :  { %v482_v5 = vadd.f32 %v481_v4, %v421_v57 }
  0xc8   :  { %774 = vmatpush.bf16.msrb.mxu3 %v2077_v12 }
  0xcc   :  { %775 = vmatpush.bf16.msrb.mxu3 %v2076_v14 }
  0xd0   :  { %776 = vmatpush.bf16.msrb.mxu3 %v2075_v16 }
  0xd4   :  { %777 = vmatpush.bf16.msrb.mxu3 %v2074_v19 }
  0xd8   :  { %778 = vmatpush.bf16.msrb.mxu3 %v2073_v26 }
  0xdc   :  { %779 = vmatpush.bf16.msrb.mxu3 %v2072_v29 }
  0xe0   :  { %1165 = vmatpush.bf16.msra.mxu3 %v2119_v32 }
 0x137   :  { %v211_v33 = vpop.f32.mrf.mxu1 }
 0x138   :  { %v212_v37 = vadd.f32 %v2138_v34, %v211_v33 }
 0x13f   :  { %v213_v41 = vpop.f32.mrf.mxu1 }
 0x140   :  { %v214_v43 = vadd.f32 %v2138_v34, %v213_v41 }
 0x144   :  { %v386_v36 = vpop.f32.mrf.mxu3 }
 0x145   :  { %v387_v38 = vadd.f32 %v2139_v35, %v386_v36 }
 0x147   :  { %v391_v39 = vadd.f32 %v387_v38, %v212_v37  ;;  %v2080_v38 = vld [vmem:[%s2695_s8 + $0x40] sm:$0xff] }
 0x148   :  { %717 = vmatpush.bf16.msrb.mxu2 %v2080_v38 }
 0x149   :  { %v393_v40 = vmul.f32 0.5, %v391_v39 }
 0x14b   :  { %2148 = vtanh.f32 %v393_v40  ;;  %718 = vmatmul.bf16.vlgmr.msrb.gmra.mxu2 %v2404_v24 }
 0x14c   :  { %v388_v42 = vpop.f32.mrf.mxu3 }
 0x14d   :  { %v389_v44 = vadd.f32 %v2139_v35, %v388_v42 }
 0x14f   :  { %v392_v45 = vadd.f32 %v389_v44, %v214_v43  ;;  %v2117_v43 = vld [vmem:[%s2692_s9 + $0xa8] sm:$0xff] }
 0x151   :  { %v394_v46 = vmul.f32 0.5, %v392_v45  ;;  %v2149_v47 = vpop.eup %2148 }
 0x152   :  { %v397_v48 = vmul.f32 0.5, %v2149_v47 }
 0x153   :  { %2150 = vtanh.f32 %v394_v46  ;;  %v2116_v46 = vld [vmem:[%s2692_s9 + $0xa0] sm:$0xff] }
 0x154   :  { %v399_v50 = vadd.f32 0.5, %v397_v48 }
 0x156   :  { %v401_v53 = vmul.f32 %v399_v50, %v391_v39  ;;  %v2118_v39 = vld [vmem:[%s2692_s9 + $0xb0] sm:$0xff] }
 0x157   :  { %1166 = vmatpush.bf16.msra.mxu3 %v2118_v39 }
 0x159   :  { %v2151_v49 = vpop.eup %2150 }
 0x15a   :  { %v398_v51 = vmul.f32 0.5, %v2151_v49 }
 0x15b   :  { %1167 = vmatpush.bf16.msra.mxu3 %v2117_v43  ;;  %v2110_v43 = vld [vmem:[%s2695_s8 + $0xb0] sm:$0xff] }
 0x15c   :  { %v400_v52 = vadd.f32 0.5, %v398_v51 }
 0x15e   :  { %v402_v54 = vmul.f32 %v400_v52, %v392_v45  ;;  %v611_v52 = vperm.slane %v2444_v56, 2 }
 0x15f   :  { %1168 = vmatpush.bf16.msra.mxu3 %v2116_v46 }
 0x160   :  { %v2437_v55 = vpack.c.bf16 %v402_v54, %v401_v53  ;;  %v2115_v54 = vld [vmem:[%s2692_s9 + $0x98] sm:$0xff] }
 0x162   :  { %557 = vmatmul.bf16.vlgmr.msrb.gmra.mxu1 %v2437_v55  ;;  %865 = vmatmul.bf16.vlgmr.msra.gmra.mxu0 %v2437_v55 }
 0x163   :  { %1169 = vmatpush.bf16.msra.mxu3 %v2115_v54 }
 0x1df   :  { %v558_v60 = vpop.f32.mrf.mxu1  ;;  %v866_v21 = vpop.f32.mrf.mxu0 }
 0x1e0   :  { %v559_v62 = vadd.f32 %v558_v60, %v500_v58  ;;  %v614_v60 = vperm.slane %v2444_v56, 3 }
 0x1e2   :  { %v563_v63 = vadd.f32 1.0, %v559_v62 }
 0x1e4   :  { %v2448_v0 = vmul.f32 %v563_v63, %v480_v61  ;;  %v2114_v61 = vld [vmem:[%s2692_s9 + $0x90] sm:$0xff] }
 0x1e5   :  { %1170 = vmatpush.bf16.msra.mxu3 %v2114_v61 }
 0x1e6   :  { %567 = vadd.xlane.f32.xlu0 %v2448_v0  ;;  %v571_v1 = vmul.f32 %v2448_v0, %v2448_v0 }
 0x1e7   :  { %v560_v2 = vpop.f32.mrf.mxu1  ;;  %v868_v31 = vpop.f32.mrf.mxu0 }
 0x1e8   :  { %v561_v3 = vadd.f32 %v560_v2, %v500_v58  ;;  %573 = vadd.xlane.f32.xlu1 %v571_v1  ;;  %v2113_v2 = vld [vmem:[%s2692_s9 + $0x88] sm:$0xff] }
 0x1e9   :  { %1171 = vmatpush.bf16.msra.mxu3 %v2113_v2  ;;  %v2098_v2 = vld [vmem:[%s2691_s7 + $0x90] sm:$0xff] }
 0x1ea   :  { %v564_v6 = vadd.f32 1.0, %v561_v3 }
 0x1ec   :  { %v2453_v7 = vmul.f32 %v564_v6, %v482_v5 }
 0x1ee   :  { %569 = vadd.xlane.f32.xlu0 %v2453_v7  ;;  %v572_v8 = vmul.f32 %v2453_v7, %v2453_v7 }
 0x1f0   :  { %575 = vadd.xlane.f32.xlu1 %v572_v8  ;;  %v2112_v8 = vld [vmem:[%s2692_s9 + $0x80] sm:$0xff] }
 0x1f1   :  { %1172 = vmatpush.bf16.msra.mxu3 %v2112_v8 }
 0x259   :  { %v568_v18 = vpop.xlane.xlu0 %567 }
 0x25a   :  { %v577_v20 = vmul.f32 0.015625, %v568_v18 }
 0x25b   :  { %v574_v22 = vpop.xlane.xlu1 %573 }
 0x25c   :  { %v581_v23 = vmul.f32 %v577_v20, %v577_v20  ;;  %v579_v25 = vmul.f32 0.015625, %v574_v22  ;;  %v585_v53 = vsub.f32 %v2448_v0, %v577_v20  ;;  %v2539_v20 = vld [vmem:[%s2694_s10 + $0x4] sm:$0xf] }
 0x25d   :  { %v808_v22 = vperm.slane %v2539_v20, 1  ;;  %v788_v26 = vperm.slane %v2539_v20, 0 }
 0x25e   :  { %v583_v28 = vsub.f32 %v579_v25, %v581_v23  ;;  %v719_v23 = vpop.f32.mrf.mxu2 }
 0x25f   :  { %v867_v25 = vadd.f32 %v866_v21, %v808_v22  ;;  %v922_v21 = vperm.slane %v2539_v20, 3 }
 0x260   :  { %v587_v30 = vadd.f32 1e-05, %v583_v28 }
 0x261   :  { %v570_v33 = vpop.xlane.xlu0 %569  ;;  %v871_v29 = vadd.f32 1.0, %v867_v25 }
 0x262   :  { %2152 = vrsqrt.f32 %v587_v30  ;;  %v578_v34 = vmul.f32 0.015625, %v570_v33  ;;  %vm595_vm1 = vweird.f32 %v587_v30 }
 0x263   :  { %v576_v35 = vpop.xlane.xlu1 %575 }
 0x264   :  { %v582_v36 = vmul.f32 %v578_v34, %v578_v34  ;;  %v580_v37 = vmul.f32 0.015625, %v576_v35  ;;  %v586_v4 = vsub.f32 %v2453_v7, %v578_v34 }
 0x266   :  { %v584_v40 = vsub.f32 %v580_v37, %v582_v36  ;;  %v721_v34 = vpop.f32.mrf.mxu2 }
 0x268   :  { %v2153_v41 = vpop.eup %2152  ;;  %v588_v42 = vadd.f32 1e-05, %v584_v40 }
 0x269   :  { %v590_v44 = vmul.f32 %v2153_v41, %v587_v30  ;;  %vm596_vm0 = vweird.f32 %v2153_v41 }
 0x26a   :  { %2154 = vrsqrt.f32 %v588_v42  ;;  %vm597_vm2 = vmor %vm595_vm1, %vm596_vm0  ;;  %vm605_vm4 = vweird.f32 %v588_v42 }
 0x26b   :  { %v591_v45 = vmul.f32 %v2153_v41, %v590_v44  ;;  %v2102_v44 = vld [vmem:[%s2691_s7 + $0xb0] sm:$0xff] }
 0x26d   :  { %v592_v47 = vmul.f32 0.5, %v591_v45  ;;  %v2109_v45 = vld [vmem:[%s2695_s8 + $0xa8] sm:$0xff] }
 0x26f   :  { %v593_v48 = vsub.f32 1.5, %v592_v47 }
 0x270   :  { %v2155_v49 = vpop.eup %2154 }
 0x271   :  { %v594_v50 = vmul.f32 %v2153_v41, %v593_v48  ;;  %v600_v51 = vmul.f32 %v2155_v49, %v588_v42  ;;  %vm606_vm3 = vweird.f32 %v2155_v49  ;;  %v2103_v42 = vld [vmem:[%s2691_s7 + $0xb8] sm:$0xff]  ;;  %v2101_v48 = vld [vmem:[%s2691_s7 + $0xa8] sm:$0xff] }
 0x272   :  { %vm607_vm5 = vmor %vm605_vm4, %vm606_vm3  ;;  %1080 = vmatpush.bf16.msra.mxu2 %v2103_v42 }
 0x273   :  { %v598_v57 = vsel %vm597_vm2, %v2153_v41, %v594_v50  ;;  %v601_v58 = vmul.f32 %v2155_v49, %v600_v51  ;;  %v2111_v41 = vld [vmem:[%s2695_s8 + $0xb8] sm:$0xff] }
 0x274   :  { %v609_v59 = vmul.f32 %v598_v57, %v585_v53  ;;  %1018 = vmatpush.bf16.msra.mxu1 %v2111_v41  ;;  %v2100_v53 = vld [vmem:[%s2691_s7 + $0xa0] sm:$0xff]  ;;  %v2107_v57 = vld [vmem:[%s2695_s8 + $0x98] sm:$0xff] }
 0x275   :  { %v602_v62 = vmul.f32 0.5, %v601_v58 }
 0x276   :  { %v612_v63 = vmul.f32 %v611_v52, %v609_v59  ;;  %1081 = vmatpush.bf16.msra.mxu2 %v2102_v44  ;;  %v2099_v59 = vld [vmem:[%s2691_s7 + $0x98] sm:$0xff] }
 0x277   :  { %v603_v1 = vsub.f32 1.5, %v602_v62  ;;  %v2106_v62 = vld [vmem:[%s2695_s8 + $0x90] sm:$0xff] }
 0x278   :  { %v615_v0 = vadd.f32 %v614_v60, %v612_v63  ;;  %1019 = vmatpush.bf16.msra.mxu1 %v2110_v43 }
 0x279   :  { %v604_v3 = vmul.f32 %v2155_v49, %v603_v1 }
 0x27a   :  { %v617_v56 = vmul.f32 0.5, %v615_v0  ;;  %1082 = vmatpush.bf16.msra.mxu2 %v2101_v48 }
 0x27b   :  { %v608_v5 = vsel %vm607_vm5, %v2155_v49, %v604_v3 }
 0x27c   :  { %v610_v6 = vmul.f32 %v608_v5, %v586_v4  ;;  %2156 = vtanh.f32 %v617_v56  ;;  %1020 = vmatpush.bf16.msra.mxu1 %v2109_v45  ;;  %v2105_v4 = vld [vmem:[%s2695_s8 + $0x88] sm:$0xff] }
 0x27e   :  { %v613_v9 = vmul.f32 %v611_v52, %v610_v6  ;;  %v2108_v52 = vld [vmem:[%s2695_s8 + $0xa0] sm:$0xff]  ;;  %1083 = vmatpush.bf16.msra.mxu2 %v2100_v53  ;;  %v2097_v6 = vld [vmem:[%s2691_s7 + $0x88] sm:$0xff] }
 0x280   :  { %v616_v10 = vadd.f32 %v614_v60, %v613_v9  ;;  %1021 = vmatpush.bf16.msra.mxu1 %v2108_v52  ;;  %v2104_v9 = vld [vmem:[%s2695_s8 + $0x80] sm:$0xff] }
 0x282   :  { %v618_v11 = vmul.f32 0.5, %v616_v10  ;;  %v2157_v12 = vpop.eup %2156  ;;  %1084 = vmatpush.bf16.msra.mxu2 %v2099_v59 }
 0x283   :  { %v621_v13 = vmul.f32 0.5, %v2157_v12 }
 0x284   :  { %2158 = vtanh.f32 %v618_v11  ;;  %1022 = vmatpush.bf16.msra.mxu1 %v2107_v57  ;;  %v2096_v11 = vld [vmem:[%s2691_s7 + $0x80] sm:$0xff] }
 0x285   :  { %v623_v7 = vadd.f32 0.5, %v621_v13 }
 0x286   :  { %1085 = vmatpush.bf16.msra.mxu2 %v2098_v2  ;;  %v2135_v2 = vld [vmem:[%s2695_s8 + $0xf8] sm:$0xff] }
 0x287   :  { %v625_v17 = vmul.f32 %v623_v7, %v615_v0  ;;  %1326 = vmatpush.bf16.msrb.mxu0 %v2135_v2 }
 0x288   :  { %1023 = vmatpush.bf16.msra.mxu1 %v2106_v62 }
 0x28a   :  { %v2159_v14 = vpop.eup %2158  ;;  %1086 = vmatpush.bf16.msra.mxu2 %v2097_v6  ;;  %v2126_v6 = vld [vmem:[%s2691_s7 + $0xf0] sm:$0xff] }
 0x28b   :  { %v622_v15 = vmul.f32 0.5, %v2159_v14 }
 0x28c   :  { %1024 = vmatpush.bf16.msra.mxu1 %v2105_v4  ;;  %v2133_v4 = vld [vmem:[%s2695_s8 + $0xe8] sm:$0xff] }
 0x28d   :  { %v624_v16 = vadd.f32 0.5, %v622_v15 }
 0x28e   :  { %1087 = vmatpush.bf16.msra.mxu2 %v2096_v11  ;;  %v2125_v11 = vld [vmem:[%s2691_s7 + $0xe8] sm:$0xff] }
 0x28f   :  { %v626_v18 = vmul.f32 %v624_v16, %v616_v10  ;;  %v919_v16 = vperm.slane %v2539_v20, 2 }
 0x290   :  { %1025 = vmatpush.bf16.msra.mxu1 %v2104_v9 }
 0x291   :  { %v627_v19 = vpack.c.bf16 %v626_v18, %v625_v17 }
 0x293   :  { %780 = vmatmul.bf16.vlgmr.msrb.gmra.mxu3 %v627_v19  ;;  %1026 = vmatmul.bf16.vlgmr.msra.gmra.mxu1 %v2404_v24 }
 0x2a3   :  { %1173 = vmatmul.bf16.vlgmr.msra.gmra.mxu3 %v2437_v55  ;;  %v869_v55 = vadd.f32 %v868_v31, %v808_v22 }
 0x2a5   :  { %v872_v37 = vadd.f32 1.0, %v869_v55 }
 0x316   :  { %v781_v27 = vpop.f32.mrf.mxu3 }
 0x317   :  { %v782_v28 = vadd.f32 %v781_v27, %v719_v23 }
 0x319   :  { %v789_v30 = vadd.f32 %v788_v26, %v782_v28 }
 0x31b   :  { %v2543_v32 = vmul.f32 %v871_v29, %v789_v30 }
 0x31d   :  { %875 = vadd.xlane.f32.xlu2 %v2543_v32  ;;  %v879_v33 = vmul.f32 %v2543_v32, %v2543_v32 }
 0x31e   :  { %v783_v35 = vpop.f32.mrf.mxu3 }
 0x31f   :  { %v784_v36 = vadd.f32 %v783_v35, %v721_v34  ;;  %881 = vadd.xlane.f32.xlu0 %v879_v33 }
 0x321   :  { %v790_v38 = vadd.f32 %v788_v26, %v784_v36 }
 0x323   :  { %v2548_v39 = vmul.f32 %v872_v37, %v790_v38 }
 0x325   :  { %877 = vadd.xlane.f32.xlu2 %v2548_v39  ;;  %v880_v40 = vmul.f32 %v2548_v39, %v2548_v39 }
 0x326   :  { %v1174_v44 = vpop.f32.mrf.mxu3 }
 0x327   :  { %883 = vadd.xlane.f32.xlu1 %v880_v40 }
 0x32e   :  { %v1176_v53 = vpop.f32.mrf.mxu3 }
 0x390   :  { %v876_v46 = vpop.xlane.xlu2 %875 }
 0x391   :  { %v885_v47 = vmul.f32 0.015625, %v876_v46  ;;  %v1027_v46 = vpop.f32.mrf.mxu1 }
 0x392   :  { %v882_v49 = vpop.xlane.xlu0 %881 }
 0x393   :  { %v889_v50 = vmul.f32 %v885_v47, %v885_v47  ;;  %v887_v51 = vmul.f32 0.015625, %v882_v49  ;;  %v893_v17 = vsub.f32 %v2543_v32, %v885_v47 }
 0x395   :  { %v891_v54 = vsub.f32 %v887_v51, %v889_v50 }
 0x397   :  { %v895_v58 = vadd.f32 1e-05, %v891_v54 }
 0x398   :  { %v878_v60 = vpop.xlane.xlu2 %877 }
 0x399   :  { %2160 = vrsqrt.f32 %v895_v58  ;;  %v886_v61 = vmul.f32 0.015625, %v878_v60  ;;  %vm903_vm7 = vweird.f32 %v895_v58  ;;  %v1029_v59 = vpop.f32.mrf.mxu1 }
 0x39a   :  { %v884_v63 = vpop.xlane.xlu1 %883 }
 0x39b   :  { %v890_v1 = vmul.f32 %v886_v61, %v886_v61  ;;  %v888_v0 = vmul.f32 0.015625, %v884_v63  ;;  %v894_v29 = vsub.f32 %v2548_v39, %v886_v61  ;;  %v2609_v39 = vld [vmem:[%s2694_s10 + $0x8] sm:$0xf] }
 0x39c   :  { %v1116_v45 = vperm.slane %v2609_v39, 1  ;;  %v1096_v48 = vperm.slane %v2609_v39, 0 }
 0x39d   :  { %v892_v3 = vsub.f32 %v888_v0, %v890_v1 }
 0x39e   :  { %v1175_v47 = vadd.f32 %v1174_v44, %v1116_v45  ;;  %v1177_v57 = vadd.f32 %v1176_v53, %v1116_v45 }
 0x39f   :  { %v2161_v56 = vpop.eup %2160  ;;  %v896_v5 = vadd.f32 1e-05, %v892_v3  ;;  %v2134_v3 = vld [vmem:[%s2695_s8 + $0xf0] sm:$0xff] }
 0x3a0   :  { %v898_v8 = vmul.f32 %v2161_v56, %v895_v58  ;;  %vm904_vm6 = vweird.f32 %v2161_v56  ;;  %v1179_v51 = vadd.f32 1.0, %v1175_v47  ;;  %v1180_v62 = vadd.f32 1.0, %v1177_v57  ;;  %1327 = vmatpush.bf16.msrb.mxu0 %v2134_v3 }
 0x3a1   :  { %2162 = vrsqrt.f32 %v896_v5  ;;  %vm905_vm8 = vmor %vm903_vm7, %vm904_vm6  ;;  %vm913_vm10 = vweird.f32 %v896_v5 }
 0x3a2   :  { %v899_v10 = vmul.f32 %v2161_v56, %v898_v8 }
 0x3a4   :  { %v900_v12 = vmul.f32 0.5, %v899_v10  ;;  %1328 = vmatpush.bf16.msrb.mxu0 %v2133_v4  ;;  %v2131_v10 = vld [vmem:[%s2695_s8 + $0xd8] sm:$0xff] }
 0x3a6   :  { %v901_v13 = vsub.f32 1.5, %v900_v12 }
 0x3a7   :  { %v2163_v14 = vpop.eup %2162 }
 0x3a8   :  { %v902_v15 = vmul.f32 %v2161_v56, %v901_v13  ;;  %v908_v7 = vmul.f32 %v2163_v14, %v896_v5  ;;  %vm914_vm9 = vweird.f32 %v2163_v14  ;;  %v2132_v5 = vld [vmem:[%s2695_s8 + $0xe0] sm:$0xff] }
 0x3a9   :  { %vm915_vm11 = vmor %vm913_vm10, %vm914_vm9  ;;  %1329 = vmatpush.bf16.msrb.mxu0 %v2132_v5 }
 0x3aa   :  { %v906_v18 = vsel %vm905_vm8, %v2161_v56, %v902_v15  ;;  %v909_v19 = vmul.f32 %v2163_v14, %v908_v7  ;;  %v2127_v56 = vld [vmem:[%s2691_s7 + $0xf8] sm:$0xff]  ;;  %v2130_v7 = vld [vmem:[%s2695_s8 + $0xd0] sm:$0xff] }
 0x3ab   :  { %v917_v22 = vmul.f32 %v906_v18, %v893_v17  ;;  %1388 = vmatpush.bf16.msrb.mxu1 %v2127_v56  ;;  %v2129_v18 = vld [vmem:[%s2695_s8 + $0xc8] sm:$0xff] }
 0x3ac   :  { %v910_v23 = vmul.f32 0.5, %v909_v19  ;;  %v2123_v19 = vld [vmem:[%s2691_s7 + $0xd8] sm:$0xff] }
 0x3ad   :  { %v920_v25 = vmul.f32 %v919_v16, %v917_v22  ;;  %1330 = vmatpush.bf16.msrb.mxu0 %v2131_v10 }
 0x3ae   :  { %v911_v26 = vsub.f32 1.5, %v910_v23 }
 0x3af   :  { %v923_v27 = vadd.f32 %v922_v21, %v920_v25  ;;  %1389 = vmatpush.bf16.msrb.mxu1 %v2126_v6 }
 0x3b0   :  { %v912_v28 = vmul.f32 %v2163_v14, %v911_v26 }
 0x3b1   :  { %v925_v30 = vmul.f32 0.5, %v923_v27  ;;  %1331 = vmatpush.bf16.msrb.mxu0 %v2130_v7 }
 0x3b2   :  { %v916_v31 = vsel %vm915_vm11, %v2163_v14, %v912_v28  ;;  %v2122_v28 = vld [vmem:[%s2691_s7 + $0xd0] sm:$0xff] }
 0x3b3   :  { %v918_v55 = vmul.f32 %v916_v31, %v894_v29  ;;  %2164 = vtanh.f32 %v925_v30  ;;  %1390 = vmatpush.bf16.msrb.mxu1 %v2125_v11 }
 0x3b5   :  { %v921_v32 = vmul.f32 %v919_v16, %v918_v55  ;;  %v2124_v16 = vld [vmem:[%s2691_s7 + $0xe0] sm:$0xff]  ;;  %1332 = vmatpush.bf16.msrb.mxu0 %v2129_v18  ;;  %v2121_v55 = vld [vmem:[%s2691_s7 + $0xc8] sm:$0xff] }
 0x3b7   :  { %v924_v33 = vadd.f32 %v922_v21, %v921_v32  ;;  %1391 = vmatpush.bf16.msrb.mxu1 %v2124_v16 }
 0x3b9   :  { %v926_v34 = vmul.f32 0.5, %v924_v33  ;;  %v2165_v35 = vpop.eup %2164 }
 0x3ba   :  { %v929_v20 = vmul.f32 0.5, %v2165_v35 }
 0x3bb   :  { %2166 = vtanh.f32 %v926_v34  ;;  %1392 = vmatpush.bf16.msrb.mxu1 %v2123_v19  ;;  %v2120_v34 = vld [vmem:[%s2691_s7 + $0xc0] sm:$0xff] }
 0x3bc   :  { %v931_v38 = vadd.f32 0.5, %v929_v20 }
 0x3be   :  { %v933_v41 = vmul.f32 %v931_v38, %v923_v27  ;;  %v2128_v27 = vld [vmem:[%s2695_s8 + $0xc0] sm:$0xff] }
 0x3bf   :  { %1333 = vmatpush.bf16.msrb.mxu0 %v2128_v27  ;;  %1393 = vmatpush.bf16.msrb.mxu1 %v2122_v28 }
 0x3c1   :  { %v2167_v36 = vpop.eup %2166 }
 0x3c2   :  { %v930_v37 = vmul.f32 0.5, %v2167_v36  ;;  %1334 = vmatmul.bf16.vlgmr.msrb.gmra.mxu0 %v2404_v24 }
 0x3c3   :  { %1394 = vmatpush.bf16.msrb.mxu1 %v2121_v55 }
 0x3c4   :  { %v932_v40 = vadd.f32 0.5, %v930_v37 }
 0x3c6   :  { %v934_v42 = vmul.f32 %v932_v40, %v924_v33  ;;  %v1227_v40 = vperm.slane %v2609_v39, 2 }
 0x3c7   :  { %1395 = vmatpush.bf16.msrb.mxu1 %v2120_v34 }
 0x3c8   :  { %v935_v43 = vpack.c.bf16 %v934_v42, %v933_v41 }
 0x3ca   :  { %1088 = vmatmul.bf16.vlgmr.msra.gmra.mxu2 %v935_v43  ;;  %v1230_v43 = vperm.slane %v2609_v39, 3 }
 0x43f   :  { %v1335_v4 = vpop.f32.mrf.mxu0 }
 0x44d   :  { %v1089_v49 = vpop.f32.mrf.mxu2 }
 0x44e   :  { %v1090_v50 = vadd.f32 %v1089_v49, %v1027_v46 }
 0x450   :  { %v1097_v52 = vadd.f32 %v1096_v48, %v1090_v50 }
 0x452   :  { %v2613_v54 = vmul.f32 %v1179_v51, %v1097_v52 }
 0x454   :  { %1183 = vadd.xlane.f32.xlu2 %v2613_v54  ;;  %v1187_v58 = vmul.f32 %v2613_v54, %v2613_v54 }
 0x455   :  { %v1091_v60 = vpop.f32.mrf.mxu2 }
 0x456   :  { %v1092_v61 = vadd.f32 %v1091_v60, %v1029_v59  ;;  %1189 = vadd.xlane.f32.xlu1 %v1187_v58 }
 0x458   :  { %v1098_v63 = vadd.f32 %v1096_v48, %v1092_v61 }
 0x45a   :  { %v2618_v1 = vmul.f32 %v1180_v62, %v1098_v63 }
 0x45c   :  { %1185 = vadd.xlane.f32.xlu0 %v2618_v1  ;;  %v1188_v0 = vmul.f32 %v2618_v1, %v2618_v1 }
 0x45e   :  { %1191 = vadd.xlane.f32.xlu2 %v1188_v0 }
 0x4c7   :  { %v1184_v8 = vpop.xlane.xlu2 %1183 }
 0x4c8   :  { %v1193_v9 = vmul.f32 0.015625, %v1184_v8 }
 0x4c9   :  { %v1190_v12 = vpop.xlane.xlu1 %1189 }
 0x4ca   :  { %v1197_v13 = vmul.f32 %v1193_v9, %v1193_v9  ;;  %v1195_v14 = vmul.f32 0.015625, %v1190_v12  ;;  %v1201_v41 = vsub.f32 %v2613_v54, %v1193_v9  ;;  %v1337_v9 = vpop.f32.mrf.mxu0 }
 0x4cc   :  { %v1199_v15 = vsub.f32 %v1195_v14, %v1197_v13 }
 0x4ce   :  { %v1203_v17 = vadd.f32 1e-05, %v1199_v15 }
 0x4cf   :  { %v1186_v21 = vpop.xlane.xlu0 %1185 }
 0x4d0   :  { %2168 = vrsqrt.f32 %v1203_v17  ;;  %v1194_v22 = vmul.f32 0.015625, %v1186_v21  ;;  %vm1211_vm13 = vweird.f32 %v1203_v17 }
 0x4d1   :  { %v1192_v23 = vpop.xlane.xlu2 %1191 }
 0x4d2   :  { %v1198_v25 = vmul.f32 %v1194_v22, %v1194_v22  ;;  %v1196_v26 = vmul.f32 0.015625, %v1192_v23  ;;  %v1202_v50 = vsub.f32 %v2618_v1, %v1194_v22  ;;  %v2023_v1 = vld [vmem:[%s2694_s10 + $0xc] sm:$0xf] }
 0x4d3   :  { %v1404_v56 = vperm.slane %v2023_v1, 0 }
 0x4d4   :  { %v1200_v29 = vsub.f32 %v1196_v26, %v1198_v25 }
 0x4d6   :  { %v2169_v30 = vpop.eup %2168  ;;  %v1204_v31 = vadd.f32 1e-05, %v1200_v29 }
 0x4d7   :  { %v1206_v32 = vmul.f32 %v2169_v30, %v1203_v17  ;;  %vm1212_vm12 = vweird.f32 %v2169_v30 }
 0x4d8   :  { %2170 = vrsqrt.f32 %v1204_v31  ;;  %vm1213_vm14 = vmor %vm1211_vm13, %vm1212_vm12  ;;  %vm1221_vm0 = vweird.f32 %v1204_v31 }
 0x4d9   :  { %v1207_v33 = vmul.f32 %v2169_v30, %v1206_v32 }
 0x4db   :  { %v1208_v35 = vmul.f32 0.5, %v1207_v33 }
 0x4dd   :  { %v1209_v20 = vsub.f32 1.5, %v1208_v35 }
 0x4de   :  { %v2171_v36 = vpop.eup %2170 }
 0x4df   :  { %v1210_v37 = vmul.f32 %v2169_v30, %v1209_v20  ;;  %v1216_v38 = vmul.f32 %v2171_v36, %v1204_v31  ;;  %vm1222_vm15 = vweird.f32 %v2171_v36 }
 0x4e0   :  { %vm1223_vm1 = vmor %vm1221_vm0, %vm1222_vm15 }
 0x4e1   :  { %v1214_v42 = vsel %vm1213_vm14, %v2169_v30, %v1210_v37  ;;  %v1217_v24 = vmul.f32 %v2171_v36, %v1216_v38 }
 0x4e2   :  { %v1225_v44 = vmul.f32 %v1214_v42, %v1201_v41 }
 0x4e3   :  { %v1218_v45 = vmul.f32 0.5, %v1217_v24 }
 0x4e4   :  { %v1228_v46 = vmul.f32 %v1227_v40, %v1225_v44 }
 0x4e5   :  { %v1219_v47 = vsub.f32 1.5, %v1218_v45 }
 0x4e6   :  { %v1231_v48 = vadd.f32 %v1230_v43, %v1228_v46 }
 0x4e7   :  { %v1220_v49 = vmul.f32 %v2171_v36, %v1219_v47 }
 0x4e8   :  { %v1233_v51 = vmul.f32 0.5, %v1231_v48 }
 0x4e9   :  { %v1224_v52 = vsel %vm1223_vm1, %v2171_v36, %v1220_v49 }
 0x4ea   :  { %v1226_v53 = vmul.f32 %v1224_v52, %v1202_v50  ;;  %2172 = vtanh.f32 %v1233_v51 }
 0x4ec   :  { %v1229_v54 = vmul.f32 %v1227_v40, %v1226_v53 }
 0x4ee   :  { %v1232_v57 = vadd.f32 %v1230_v43, %v1229_v54 }
 0x4f0   :  { %v1234_v58 = vmul.f32 0.5, %v1232_v57  ;;  %v2173_v59 = vpop.eup %2172 }
 0x4f1   :  { %v1237_v39 = vmul.f32 0.5, %v2173_v59 }
 0x4f2   :  { %2174 = vtanh.f32 %v1234_v58 }
 0x4f3   :  { %v1239_v62 = vadd.f32 0.5, %v1237_v39 }
 0x4f5   :  { %v1241_v0 = vmul.f32 %v1239_v62, %v1231_v48 }
 0x4f8   :  { %v2175_v60 = vpop.eup %2174 }
 0x4f9   :  { %v1238_v61 = vmul.f32 0.5, %v2175_v60 }
 0x4fb   :  { %v1240_v63 = vadd.f32 0.5, %v1238_v61 }
 0x4fd   :  { %v1242_v2 = vmul.f32 %v1240_v63, %v1232_v57 }
 0x4ff   :  { %v1243_v3 = vpack.c.bf16 %v1242_v2, %v1241_v0 }
 0x501   :  { %1396 = vmatmul.bf16.vlgmr.msrb.gmra.mxu1 %v1243_v3 }
 0x57e   :  { %v1397_v5 = vpop.f32.mrf.mxu1 }
 0x57f   :  { %v1398_v6 = vadd.f32 %v1397_v5, %v1335_v4 }
 0x581   :  { %v1405_v8 = vadd.f32 %v1404_v56, %v1398_v6 }
 0x583   :  { %1407 = vst [vmem:[%s2696_s11] sm:$0xff] %v1405_v8 }
 0x586   :  { %v1399_v10 = vpop.f32.mrf.mxu1 }
 0x587   :  { %v1400_v11 = vadd.f32 %v1399_v10, %v1337_v9 }
 0x589   :  { %v1406_v12 = vadd.f32 %v1404_v56, %v1400_v11 }
 0x58b   :  { %1408 = vst [vmem:[%s2696_s11 + $0x8] sm:$0xff] %v1406_v12 }

</bundles_post_ra>
